<compile_context>
chip_gen: v7x
topology: tpu7x:2x2x1
jax: 0.10.0
libtpu: 0.0.40
codegen_flags: <defaults>
</compile_context>

<pallas_src>
import numpy as np

import jax
import jax.numpy as jnp
from jax import lax
from jax.experimental import pallas as pl
from jax.experimental.pallas import tpu as pltpu

# ----------------------------- model config ---------------------------------
BATCH = 4            # samples per domain
IN_CH = 4            # image channels
SPATIAL = 16         # H = W
FEAT_DIM = 128       # stand-in backbone output dim (lane-dense)
BOTTLENECK = 128     # bottleneck_width (lane-dense)
NUM_CLASS = 5
MMD_KERNEL_MUL = 2.0
MMD_KERNEL_NUM = 5

TWO_N = 2 * BATCH
H = W = SPATIAL
R_OUT = TWO_N * H * W            # conv-output rows (valid positions only) = 2048
K_IM2COL = 9 * IN_CH             # 36
K_PAD = 48                       # 36 im2col cols + 1 ones-col (bias) + zero pad


def _build_pool():
    """(2N, R_OUT) bf16 block-diagonal matrix: pool @ conv_map = per-image GAP.

    1/(H*W) = 1/256 is bf16-exact; accumulation happens in f32 on the MXU."""
    pool = np.kron(np.eye(TWO_N, dtype=np.float32),
                   np.full((1, H * W), 1.0 / (H * W), np.float32))
    return jnp.asarray(pool, dtype=jnp.bfloat16)


_POOL = _build_pool()
_VMEM_SPEC = pl.BlockSpec(memory_space=pltpu.MemorySpace.VMEM)


# ------------------------------ fused kernel ---------------------------------
def _transfernet_kernel(x3_ref, convw_ref, pool_ref, bnw_ref, clsw_ref,
                        const_ref, out_ref):
    f32 = jnp.float32

    # ---- stand-in backbone: single bf16 im2col matmul (+ folded bias) + ReLU ----
    conv = jnp.dot(x3_ref[...], convw_ref[...],
                   preferred_element_type=f32)                      # (R_OUT, FEAT) f32
    h = jnp.maximum(conv, 0.0)                                      # ReLU in f32 (v5e)

    # ---- global average pooling as one bf16 pooling matmul, f32 accumulate ----
    feat = jnp.dot(pool_ref[...], h.astype(jnp.bfloat16),
                   preferred_element_type=f32)                      # (2N, FEAT)

    # ---- unpack the small-constant tile ----
    consts = const_ref[...]                                         # (8, 128)
    bnb = consts[0:1, :]                                            # (1, BOTTLENECK)
    clsb = consts[1:2, 0:NUM_CLASS]                                 # (1, NUM_CLASS)
    onehot = consts[2:2 + BATCH, 0:NUM_CLASS]                       # (BATCH, NUM_CLASS)

    # ---- bottleneck Linear + ReLU (shared for source & target), f32 ----
    b = jnp.maximum(
        jnp.dot(feat, bnw_ref[...], preferred_element_type=f32) + bnb, 0.0)

    # ---- source classifier (source rows [:N], target rows [N:]) ----
    logits = jnp.dot(b, clsw_ref[...], preferred_element_type=f32) + clsb
    src_logits = logits[:BATCH, :]
    tgt_logits = logits[BATCH:, :]

    # ---- target softmax (EUP reciprocal; ~1e-3 rel error on confidences,
    #      argmax pseudo-labels unaffected) ----
    tmax = jnp.max(tgt_logits, axis=-1, keepdims=True)
    te = jnp.exp(tgt_logits - tmax)
    tprob = te * pl.reciprocal(jnp.sum(te, axis=-1, keepdims=True), approx=True)

    # ---- source cross-entropy (mean reduction) ----
    smax = jnp.max(src_logits, axis=-1, keepdims=True)
    lse = jnp.log(jnp.sum(jnp.exp(src_logits - smax), axis=-1, keepdims=True)) + smax
    nll = -jnp.sum(onehot * (src_logits - lse), axis=-1, keepdims=True)
    clf_loss = jnp.sum(nll) * (1.0 / BATCH)

    # ---- Gaussian multi-kernel MMD on bottleneck features (all f32) ----
    sq = jnp.sum(b * b, axis=-1, keepdims=True)                     # (2N, 1)
    gram = jnp.dot(b, b.T, preferred_element_type=f32)              # (2N, 2N)
    l2 = jnp.maximum(sq + jnp.transpose(sq) - 2.0 * gram, 0.0)
    n2 = TWO_N
    bw = jnp.sum(l2) * (1.0 / float(n2 * n2 - n2))
    bw = jnp.maximum(bw, 1e-12) * (1.0 / (MMD_KERNEL_MUL ** (MMD_KERNEL_NUM // 2)))
    inv_bw = 1.0 / bw                                               # one scalar divide
    kmat = jnp.zeros_like(l2)
    for i in range(MMD_KERNEL_NUM):
        scale = -(1.0 / (MMD_KERNEL_MUL ** i)) * inv_bw
        kmat = kmat + jnp.exp(l2 * scale)                           # no per-element divide
    xx = kmat[:BATCH, :BATCH]
    yy = kmat[BATCH:, BATCH:]
    xy = kmat[:BATCH, BATCH:]
    yx = kmat[BATCH:, :BATCH]
    mmd = jnp.mean(xx + yy - xy - yx)

    total_loss = clf_loss + mmd

    # ---- pack everything into ONE lane-dense (8, 128) output tile ----
    # rows 0:BATCH              -> target backbone features
    # rows BATCH:2N, cols 0:5   -> target softmax probabilities
    # [BATCH, NUM_CLASS]        -> total loss (clf + mmd)
    tgt_feat = feat[BATCH:, :]                                      # (BATCH, FEAT)
    bottom = jnp.concatenate(
        [tprob, jnp.zeros((BATCH, FEAT_DIM - NUM_CLASS), f32)], axis=-1)
    col_idx = lax.broadcasted_iota(jnp.int32, (BATCH, FEAT_DIM), 1)
    bottom = jnp.where(col_idx == NUM_CLASS, total_loss, bottom)
    out_ref[...] = jnp.concatenate([tgt_feat, bottom], axis=0)      # one full store


# ------------------------------ forward wrapper -------------------------------
def transfernet_forward(params, source, target, labels):
    """Main branch of TransferNet.forward (source is not None, transfer_loss='mmd')."""
    f32 = jnp.float32
    bf16 = jnp.bfloat16

    # one pass over source+target
    x = jnp.concatenate([source, target], axis=0)                    # (2N, C, H, W)

    # full 36-wide im2col built in XLA (tiny: 2048 x 36), (di, dj, c) column order
    xp = jnp.pad(jnp.transpose(x, (0, 2, 3, 1)), ((0, 0), (1, 1), (1, 1), (0, 0)))
    patches = [xp[:, di:di + H, dj:dj + W, :] for di in range(3) for dj in range(3)]
    x36 = jnp.concatenate(patches, axis=-1).reshape(R_OUT, K_IM2COL)
    # append ones-column (folds conv bias) + zero pad to K_PAD; cast to bf16
    x3a = jnp.concatenate(
        [x36, jnp.ones((R_OUT, 1), f32), jnp.zeros((R_OUT, K_PAD - K_IM2COL - 1), f32)],
        axis=-1).astype(bf16)                                        # (R_OUT, K_PAD) bf16

    # conv weight (F, C, 3, 3) -> (di*3C + dj*C + c, F), bias row appended, bf16
    w36 = jnp.transpose(params["conv_w"], (2, 3, 1, 0)).reshape(K_IM2COL, FEAT_DIM)
    convw_a = jnp.concatenate(
        [w36, params["conv_b"].reshape(1, FEAT_DIM),
         jnp.zeros((K_PAD - K_IM2COL - 1, FEAT_DIM), f32)], axis=0).astype(bf16)

    # small constants packed into one (8, 128) tile
    consts = jnp.zeros((TWO_N, FEAT_DIM), f32)
    consts = consts.at[0, :].set(params["bn_b"])
    consts = consts.at[1, :NUM_CLASS].set(params["src_cls_b"])
    consts = consts.at[2:2 + BATCH, :NUM_CLASS].set(
        jax.nn.one_hot(labels, NUM_CLASS, dtype=f32))

    packed = pl.pallas_call(
        _transfernet_kernel,
        out_shape=jax.ShapeDtypeStruct((TWO_N, FEAT_DIM), f32),
        in_specs=[_VMEM_SPEC] * 6,
        out_specs=_VMEM_SPEC,
        compiler_params=pltpu.CompilerParams(vmem_limit_bytes=32 * 1024 * 1024),
    )(x3a, convw_a, _POOL, params["bn_w"], params["src_cls_w"], consts)

    source_loss = packed[BATCH, NUM_CLASS]
    target_f = lax.stop_gradient(packed[:BATCH, :])
    tprob = lax.stop_gradient(packed[BATCH:, :NUM_CLASS])
    target_label = (jnp.max(tprob, axis=1), jnp.argmax(tprob, axis=1))
    return source_loss, target_f, target_label


# ------------------------------ parameter init -------------------------------
def init_params(key):
    ks = jax.random.split(key, 8)
    return {
        # stand-in backbone conv: (Cout, Cin, 3, 3) like torch
        "conv_w": 0.1 * jax.random.normal(ks[0], (FEAT_DIM, IN_CH, 3, 3), jnp.float32),
        "conv_b": 0.01 * jax.random.normal(ks[1], (FEAT_DIM,), jnp.float32),
        # bottleneck Linear(FEAT_DIM, BOTTLENECK) stored as (in, out)
        "bn_w": 0.1 * jax.random.normal(ks[2], (FEAT_DIM, BOTTLENECK), jnp.float32),
        "bn_b": 0.01 * jax.random.normal(ks[3], (BOTTLENECK,), jnp.float32),
        # source classifier Linear(BOTTLENECK, NUM_CLASS)
        "src_cls_w": 0.1 * jax.random.normal(ks[4], (BOTTLENECK, NUM_CLASS), jnp.float32),
        "src_cls_b": 0.01 * jax.random.normal(ks[5], (NUM_CLASS,), jnp.float32),
        # target classifier / bottleneck1 exist in the module but are unused here
        "tgt_cls_w": 0.1 * jax.random.normal(ks[6], (BOTTLENECK, NUM_CLASS), jnp.float32),
        "tgt_cls_b": 0.01 * jax.random.normal(ks[7], (NUM_CLASS,), jnp.float32),
    }


# ------------------------------------ main ------------------------------------
if __name__ == "__main__":
    key = jax.random.PRNGKey(0)
    k_par, k_src, k_tgt, k_lab = jax.random.split(key, 4)

    params = init_params(k_par)
    source = jax.random.normal(k_src, (BATCH, IN_CH, SPATIAL, SPATIAL), jnp.float32)
    target = jax.random.normal(k_tgt, (BATCH, IN_CH, SPATIAL, SPATIAL), jnp.float32)
    labels = jax.random.randint(k_lab, (BATCH,), 0, NUM_CLASS, jnp.int32)

    fwd = jax.jit(transfernet_forward)
    source_loss, target_f, (tgt_conf, tgt_idx) = fwd(params, source, target, labels)
    jax.block_until_ready((source_loss, target_f, tgt_conf, tgt_idx))

    assert source_loss.shape == ()
    assert target_f.shape == (BATCH, FEAT_DIM)
    assert tgt_conf.shape == (BATCH,) and tgt_idx.shape == (BATCH,)
    assert bool(jnp.isfinite(source_loss))
    assert bool(jnp.all(jnp.isfinite(target_f)))
    assert bool(jnp.all(jnp.isfinite(tgt_conf)))

    print("KERNEL_OK")
</pallas_src>

<mosaic_0001>
module attributes {stable_mosaic.version = 11 : i64} {
  func.func @_transfernet_kernel(%arg0: memref<2048x48xbf16, #tpu.memory_space<vmem>>, %arg1: memref<48x128xbf16, #tpu.memory_space<vmem>>, %arg2: memref<8x2048xbf16, #tpu.memory_space<vmem>>, %arg3: memref<128x128xf32, #tpu.memory_space<vmem>>, %arg4: memref<128x5xf32, #tpu.memory_space<vmem>>, %arg5: memref<8x128xf32, #tpu.memory_space<vmem>>, %arg6: memref<8x128xf32, #tpu.memory_space<vmem>>) attributes {dimension_semantics = [], scalar_prefetch = 0 : i64, scratch_operands = 0 : i64, tpu.core_type = #tpu.core_type<tc>} {
    %c0 = arith.constant 0 : index
    %c0_0 = arith.constant 0 : index
    %0 = vector.load %arg0[%c0, %c0_0] : memref<2048x48xbf16, #tpu.memory_space<vmem>>, vector<2048x48xbf16>
    %c0_1 = arith.constant 0 : index
    %c0_2 = arith.constant 0 : index
    %1 = vector.load %arg1[%c0_1, %c0_2] : memref<48x128xbf16, #tpu.memory_space<vmem>>, vector<48x128xbf16>
    %cst = arith.constant dense<0.000000e+00> : vector<2048x128xf32>
    %2 = tpu.matmul %0, %1, %cst {dimension_numbers = #tpu.dot_dimension_numbers<[1], [0], [0], [1], [0, 0, 1, 1], [], []>} : vector<2048x48xbf16>, vector<48x128xbf16>, vector<2048x128xf32> -> vector<2048x128xf32>
    %cst_3 = arith.constant 0.000000e+00 : f32
    %3 = vector.broadcast %cst_3 : f32 to vector<2048x128xf32>
    %4 = arith.maximumf %2, %3 : vector<2048x128xf32>
    %c0_4 = arith.constant 0 : index
    %c0_5 = arith.constant 0 : index
    %5 = vector.load %arg2[%c0_4, %c0_5] : memref<8x2048xbf16, #tpu.memory_space<vmem>>, vector<8x2048xbf16>
    %6 = arith.truncf %4 : vector<2048x128xf32> to vector<2048x128xbf16>
    %cst_6 = arith.constant dense<0.000000e+00> : vector<8x128xf32>
    %7 = tpu.matmul %5, %6, %cst_6 {dimension_numbers = #tpu.dot_dimension_numbers<[1], [0], [0], [1], [0, 0, 1, 1], [], []>} : vector<8x2048xbf16>, vector<2048x128xbf16>, vector<8x128xf32> -> vector<8x128xf32>
    %c0_7 = arith.constant 0 : index
    %c0_8 = arith.constant 0 : index
    %8 = vector.load %arg5[%c0_7, %c0_8] : memref<8x128xf32, #tpu.memory_space<vmem>>, vector<8x128xf32>
    %9 = vector.extract_strided_slice %8 {offsets = [0, 0], sizes = [1, 128], strides = [1, 1]} : vector<8x128xf32> to vector<1x128xf32>
    %10 = vector.extract_strided_slice %8 {offsets = [1, 0], sizes = [1, 5], strides = [1, 1]} : vector<8x128xf32> to vector<1x5xf32>
    %11 = vector.extract_strided_slice %8 {offsets = [2, 0], sizes = [4, 5], strides = [1, 1]} : vector<8x128xf32> to vector<4x5xf32>
    %c0_9 = arith.constant 0 : index
    %c0_10 = arith.constant 0 : index
    %12 = vector.load %arg3[%c0_9, %c0_10] : memref<128x128xf32, #tpu.memory_space<vmem>>, vector<128x128xf32>
    %cst_11 = arith.constant dense<0.000000e+00> : vector<8x128xf32>
    %13 = tpu.matmul %7, %12, %cst_11 {dimension_numbers = #tpu.dot_dimension_numbers<[1], [0], [0], [1], [0, 0, 1, 1], [], []>} : vector<8x128xf32>, vector<128x128xf32>, vector<8x128xf32> -> vector<8x128xf32>
    %14 = vector.broadcast %9 : vector<1x128xf32> to vector<8x128xf32>
    %15 = arith.addf %13, %14 : vector<8x128xf32>
    %cst_12 = arith.constant 0.000000e+00 : f32
    %16 = vector.broadcast %cst_12 : f32 to vector<8x128xf32>
    %17 = arith.maximumf %15, %16 : vector<8x128xf32>
    %c0_13 = arith.constant 0 : index
    %c0_14 = arith.constant 0 : index
    %18 = vector.load %arg4[%c0_13, %c0_14] : memref<128x5xf32, #tpu.memory_space<vmem>>, vector<128x5xf32>
    %cst_15 = arith.constant dense<0.000000e+00> : vector<8x5xf32>
    %19 = tpu.matmul %17, %18, %cst_15 {dimension_numbers = #tpu.dot_dimension_numbers<[1], [0], [0], [1], [0, 0, 1, 1], [], []>} : vector<8x128xf32>, vector<128x5xf32>, vector<8x5xf32> -> vector<8x5xf32>
    %20 = vector.broadcast %10 : vector<1x5xf32> to vector<8x5xf32>
    %21 = arith.addf %19, %20 : vector<8x5xf32>
    %22 = vector.extract_strided_slice %21 {offsets = [0, 0], sizes = [4, 5], strides = [1, 1]} : vector<8x5xf32> to vector<4x5xf32>
    %23 = vector.extract_strided_slice %21 {offsets = [4, 0], sizes = [4, 5], strides = [1, 1]} : vector<8x5xf32> to vector<4x5xf32>
    %cst_16 = arith.constant dense<0xFF800000> : vector<4xf32>
    %24 = vector.multi_reduction <maximumf>, %23, %cst_16 [1] : vector<4x5xf32> to vector<4xf32>
    %25 = vector.shape_cast %24 : vector<4xf32> to vector<4x1xf32>
    %26 = vector.broadcast %25 : vector<4x1xf32> to vector<4x5xf32>
    %27 = arith.subf %23, %26 : vector<4x5xf32>
    %28 = math.exp %27 : vector<4x5xf32>
    %cst_17 = arith.constant dense<0.000000e+00> : vector<4xf32>
    %29 = vector.multi_reduction <add>, %28, %cst_17 [1] : vector<4x5xf32> to vector<4xf32>
    %30 = vector.shape_cast %29 : vector<4xf32> to vector<4x1xf32>
    %31 = tpu.reciprocal %30 {approx = true} : vector<4x1xf32> -> vector<4x1xf32>
    %32 = vector.broadcast %31 : vector<4x1xf32> to vector<4x5xf32>
    %33 = arith.mulf %28, %32 : vector<4x5xf32>
    %cst_18 = arith.constant dense<0xFF800000> : vector<4xf32>
    %34 = vector.multi_reduction <maximumf>, %22, %cst_18 [1] : vector<4x5xf32> to vector<4xf32>
    %35 = vector.shape_cast %34 : vector<4xf32> to vector<4x1xf32>
    %36 = vector.broadcast %35 : vector<4x1xf32> to vector<4x5xf32>
    %37 = arith.subf %22, %36 : vector<4x5xf32>
    %38 = math.exp %37 : vector<4x5xf32>
    %cst_19 = arith.constant dense<0.000000e+00> : vector<4xf32>
    %39 = vector.multi_reduction <add>, %38, %cst_19 [1] : vector<4x5xf32> to vector<4xf32>
    %40 = vector.shape_cast %39 : vector<4xf32> to vector<4x1xf32>
    %41 = math.log %40 : vector<4x1xf32>
    %42 = arith.addf %41, %35 : vector<4x1xf32>
    %43 = vector.broadcast %42 : vector<4x1xf32> to vector<4x5xf32>
    %44 = arith.subf %22, %43 : vector<4x5xf32>
    %45 = arith.mulf %11, %44 : vector<4x5xf32>
    %cst_20 = arith.constant dense<0.000000e+00> : vector<4xf32>
    %46 = vector.multi_reduction <add>, %45, %cst_20 [1] : vector<4x5xf32> to vector<4xf32>
    %47 = vector.shape_cast %46 : vector<4xf32> to vector<4x1xf32>
    %cst_21 = arith.constant 0.000000e+00 : f32
    %48 = vector.broadcast %cst_21 : f32 to vector<4x1xf32>
    %49 = arith.subf %48, %47 : vector<4x1xf32>
    %50 = vector.shape_cast %49 : vector<4x1xf32> to vector<1x4x1xf32>
    %cst_22 = arith.constant dense<0.000000e+00> : vector<1xf32>
    %51 = vector.multi_reduction <add>, %50, %cst_22 [1, 2] : vector<1x4x1xf32> to vector<1xf32>
    %52 = vector.shape_cast %51 : vector<1xf32> to vector<1x1x1xf32>
    %53 = vector.extract %52[0, 0, 0] : f32 from vector<1x1x1xf32>
    %cst_23 = arith.constant 2.500000e-01 : f32
    %54 = arith.mulf %53, %cst_23 : f32
    %55 = arith.mulf %17, %17 : vector<8x128xf32>
    %cst_24 = arith.constant dense<0.000000e+00> : vector<8xf32>
    %56 = vector.multi_reduction <add>, %55, %cst_24 [1] : vector<8x128xf32> to vector<8xf32>
    %57 = vector.shape_cast %56 : vector<8xf32> to vector<8x1xf32>
    %58 = tpu.transpose %17, [1, 0] : vector<8x128xf32> -> vector<128x8xf32>
    %cst_25 = arith.constant dense<0.000000e+00> : vector<8x8xf32>
    %59 = tpu.matmul %17, %58, %cst_25 {dimension_numbers = #tpu.dot_dimension_numbers<[1], [0], [0], [1], [0, 0, 1, 1], [], []>} : vector<8x128xf32>, vector<128x8xf32>, vector<8x8xf32> -> vector<8x8xf32>
    %60 = tpu.transpose %57, [1, 0] : vector<8x1xf32> -> vector<1x8xf32>
    %61 = vector.broadcast %57 : vector<8x1xf32> to vector<8x8xf32>
    %62 = vector.broadcast %60 : vector<1x8xf32> to vector<8x8xf32>
    %63 = arith.addf %61, %62 : vector<8x8xf32>
    %cst_26 = arith.constant 2.000000e+00 : f32
    %64 = vector.broadcast %cst_26 : f32 to vector<8x8xf32>
    %65 = arith.mulf %64, %59 : vector<8x8xf32>
    %66 = arith.subf %63, %65 : vector<8x8xf32>
    %cst_27 = arith.constant 0.000000e+00 : f32
    %67 = vector.broadcast %cst_27 : f32 to vector<8x8xf32>
    %68 = arith.maximumf %66, %67 : vector<8x8xf32>
    %69 = vector.shape_cast %68 : vector<8x8xf32> to vector<1x8x8xf32>
    %cst_28 = arith.constant dense<0.000000e+00> : vector<1xf32>
    %70 = vector.multi_reduction <add>, %69, %cst_28 [1, 2] : vector<1x8x8xf32> to vector<1xf32>
    %71 = vector.shape_cast %70 : vector<1xf32> to vector<1x1x1xf32>
    %72 = vector.extract %71[0, 0, 0] : f32 from vector<1x1x1xf32>
    %cst_29 = arith.constant 0.0178571437 : f32
    %73 = arith.mulf %72, %cst_29 : f32
    %cst_30 = arith.constant 9.99999996E-13 : f32
    %74 = arith.maximumf %73, %cst_30 : f32
    %cst_31 = arith.constant 2.500000e-01 : f32
    %75 = arith.mulf %74, %cst_31 : f32
    %cst_32 = arith.constant 1.000000e+00 : f32
    %76 = arith.divf %cst_32, %75 : f32
    %cst_33 = arith.constant 0.000000e+00 : f32
    %77 = vector.broadcast %cst_33 : f32 to vector<8x8xf32>
    %cst_34 = arith.constant -1.000000e+00 : f32
    %78 = arith.mulf %cst_34, %76 : f32
    %79 = vector.broadcast %78 : f32 to vector<8x8xf32>
    %80 = arith.mulf %68, %79 : vector<8x8xf32>
    %81 = math.exp %80 : vector<8x8xf32>
    %82 = arith.addf %77, %81 : vector<8x8xf32>
    %cst_35 = arith.constant -5.000000e-01 : f32
    %83 = arith.mulf %cst_35, %76 : f32
    %84 = vector.broadcast %83 : f32 to vector<8x8xf32>
    %85 = arith.mulf %68, %84 : vector<8x8xf32>
    %86 = math.exp %85 : vector<8x8xf32>
    %87 = arith.addf %82, %86 : vector<8x8xf32>
    %cst_36 = arith.constant -2.500000e-01 : f32
    %88 = arith.mulf %cst_36, %76 : f32
    %89 = vector.broadcast %88 : f32 to vector<8x8xf32>
    %90 = arith.mulf %68, %89 : vector<8x8xf32>
    %91 = math.exp %90 : vector<8x8xf32>
    %92 = arith.addf %87, %91 : vector<8x8xf32>
    %cst_37 = arith.constant -1.250000e-01 : f32
    %93 = arith.mulf %cst_37, %76 : f32
    %94 = vector.broadcast %93 : f32 to vector<8x8xf32>
    %95 = arith.mulf %68, %94 : vector<8x8xf32>
    %96 = math.exp %95 : vector<8x8xf32>
    %97 = arith.addf %92, %96 : vector<8x8xf32>
    %cst_38 = arith.constant -6.250000e-02 : f32
    %98 = arith.mulf %cst_38, %76 : f32
    %99 = vector.broadcast %98 : f32 to vector<8x8xf32>
    %100 = arith.mulf %68, %99 : vector<8x8xf32>
    %101 = math.exp %100 : vector<8x8xf32>
    %102 = arith.addf %97, %101 : vector<8x8xf32>
    %103 = vector.extract_strided_slice %102 {offsets = [0, 0], sizes = [4, 4], strides = [1, 1]} : vector<8x8xf32> to vector<4x4xf32>
    %104 = vector.extract_strided_slice %102 {offsets = [4, 4], sizes = [4, 4], strides = [1, 1]} : vector<8x8xf32> to vector<4x4xf32>
    %105 = vector.extract_strided_slice %102 {offsets = [0, 4], sizes = [4, 4], strides = [1, 1]} : vector<8x8xf32> to vector<4x4xf32>
    %106 = vector.extract_strided_slice %102 {offsets = [4, 0], sizes = [4, 4], strides = [1, 1]} : vector<8x8xf32> to vector<4x4xf32>
    %107 = arith.addf %103, %104 : vector<4x4xf32>
    %108 = arith.subf %107, %105 : vector<4x4xf32>
    %109 = arith.subf %108, %106 : vector<4x4xf32>
    %110 = vector.shape_cast %109 : vector<4x4xf32> to vector<1x4x4xf32>
    %cst_39 = arith.constant dense<0.000000e+00> : vector<1xf32>
    %111 = vector.multi_reduction <add>, %110, %cst_39 [1, 2] : vector<1x4x4xf32> to vector<1xf32>
    %112 = vector.shape_cast %111 : vector<1xf32> to vector<1x1x1xf32>
    %113 = vector.extract %112[0, 0, 0] : f32 from vector<1x1x1xf32>
    %cst_40 = arith.constant 1.600000e+01 : f32
    %114 = arith.divf %113, %cst_40 : f32
    %115 = arith.addf %54, %114 : f32
    %116 = vector.extract_strided_slice %7 {offsets = [4, 0], sizes = [4, 128], strides = [1, 1]} : vector<8x128xf32> to vector<4x128xf32>
    %cst_41 = arith.constant 0.000000e+00 : f32
    %117 = vector.broadcast %cst_41 : f32 to vector<4x123xf32>
    %118 = tpu.concatenate %33, %117 in 1 : vector<4x5xf32>, vector<4x123xf32> -> vector<4x128xf32>
    %119 = tpu.iota {dimensions = array<i32: 1>} : vector<4x128xi32>
    %c5_i32 = arith.constant 5 : i32
    %120 = vector.broadcast %c5_i32 : i32 to vector<4x128xi32>
    %121 = arith.cmpi eq, %119, %120 : vector<4x128xi32>
    %122 = vector.broadcast %115 : f32 to vector<4x128xf32>
    %123 = arith.select %121, %122, %118 : vector<4x128xi1>, vector<4x128xf32>
    %124 = tpu.concatenate %116, %123 in 0 : vector<4x128xf32>, vector<4x128xf32> -> vector<8x128xf32>
    %c0_42 = arith.constant 0 : index
    %c0_43 = arith.constant 0 : index
    %125 = vector.load %arg6[%c0_42, %c0_43] : memref<8x128xf32, #tpu.memory_space<vmem>>, vector<8x128xf32>
    tpu.vector_store %arg6[%c0_42, %c0_43], %124 {strides = array<i32>} : memref<8x128xf32, #tpu.memory_space<vmem>>, vector<8x128xf32>,
    return
  }
}

</mosaic_0001>

<bundles_post_ra>
// kernel: transfernet_forward.1
= control target key start
LH: loop header
LB: loop body
LE: loop exit
PB: predicated region body
PF: predicated region fallthrough
CT: control target
= control target key end

     0   :  { %vm944_vm0 = vcmask 392192   ;;  %vm4780_vm1 = vmmov 0   ;;  %vm3348_vm2 = vcmask 35840   ;;  %vm3366_vm3 = vcmask 37890   ;;  %s4783_s16 = smov 124   ;;  %s5750_s1 = inlined_call_operand.vmem [shape: bf16[48,128], index: 1, kind: input, shape index: {}]   ;;  %s5751_s0 = inlined_call_operand.vmem [shape: bf16[2048,48], index: 0, kind: input, shape index: {}]   ;;  %s5752_s2 = inlined_call_operand.vmem [shape: bf16[8,2048], index: 2, kind: input, shape index: {}]   ;;  %s5753_s3 = inlined_call_operand.vmem [shape: f32[128,128], index: 3, kind: input, shape index: {}]   ;;  %s5754_s4 = inlined_call_operand.vmem [shape: f32[128,5], index: 4, kind: input, shape index: {}]   ;;  %s5755_s5 = inlined_call_operand.vmem [shape: f32[8,128], index: 5, kind: input, shape index: {}]   ;;  %s5756_s6 = inlined_call_operand.vmem [shape: f32[8,128], index: 6, kind: output, shape index: {}]  }
   0x1   :  { %v4612_v0 = vld [vmem:[%s5750_s1] sm:$0xff]   ;;  %v4613_v1 = vld [vmem:[%s5750_s1 + $0x8] sm:$0xff]   ;;  %v4614_v3 = vld [vmem:[%s5750_s1 + $0x10] sm:$0xff]   ;;  %vm3374_vm4 = vcmask 3072   ;;  %vm3499_vm5 = vcmask 64512   ;;  %vm3336_vm6 = vcmask 39940  }
   0x2   :  { %4208 = vmatprep.subr.bf16.mxu0 %v4612_v0  ;;  %4593 = vmatprep.subr.bf16.mxu1 %v4612_v0  ;;  %v4615_v2 = vld [vmem:[%s5751_s0] sm:$0xff]   ;;  %v4616_v4 = vld [vmem:[%s5751_s0 + $0x8] sm:$0xff]   ;;  %v4617_v5 = vld [vmem:[%s5751_s0 + $0x10] sm:$0xff]   ;;  %s4782_s1 = smov 1e-12   ;;  %vm3558_vm7 = vcmask 27648  }
   0x3   :  { %4209 = vmatpush3.bf16.msra.mxu0 %v4612_v0  ;;  %4596 = vmatpush3.bf16.msra.mxu1 %v4612_v0  ;;  %v4618_v6 = vld [vmem:[%s5751_s0 + $0x18] sm:$0xff]   ;;  %v4619_v7 = vld [vmem:[%s5751_s0 + $0x20] sm:$0xff]   ;;  %v4620_v8 = vld [vmem:[%s5751_s0 + $0x28] sm:$0xff]   ;;  %vm3573_vm8 = vcmask 39936   ;;  %vm3583_vm10 = vcmask 1043456  }
   0x4   :  { %4210 = vmatprep.subr.bf16.mxu0 %v4613_v1  ;;  %4594 = vmatprep.subr.bf16.mxu1 %v4613_v1  ;;  %v4621_v9 = vld [vmem:[%s5751_s0 + $0x30] sm:$0xff]   ;;  %v4622_v10 = vld [vmem:[%s5751_s0 + $0x38] sm:$0xff]   ;;  %v4623_v11 = vld [vmem:[%s5751_s0 + $0x40] sm:$0xff]  }
   0x5   :  { %4214 = vmatprep.mubr.msk.bf16.mxu0 %vm944_vm0, %v4615_v2  ;;  %v4624_v12 = vld [vmem:[%s5751_s0 + $0x48] sm:$0xff]   ;;  %v4625_v13 = vld [vmem:[%s5751_s0 + $0x50] sm:$0xff]   ;;  %v4626_v14 = vld [vmem:[%s5751_s0 + $0x58] sm:$0xff]  }
   0x6   :  { %v4627_v15 = vld [vmem:[%s5751_s0 + $0x60] sm:$0xff]   ;;  %v4628_v16 = vld [vmem:[%s5751_s0 + $0x68] sm:$0xff]   ;;  %v4629_v17 = vld [vmem:[%s5751_s0 + $0x70] sm:$0xff]  }
   0x7   :  { %4211 = vmatpush3.bf16.msra.mxu0 %v4613_v1  ;;  %4597 = vmatpush3.bf16.msra.mxu1 %v4613_v1  ;;  %v4630_v18 = vld [vmem:[%s5751_s0 + $0x78] sm:$0xff]   ;;  %v4631_v19 = vld [vmem:[%s5751_s0 + $0x80] sm:$0xff]   ;;  %v4632_v20 = vld [vmem:[%s5751_s0 + $0x88] sm:$0xff]  }
   0x8   :  { %4212 = vmatprep.subr.bf16.mxu0 %v4614_v3  ;;  %4595 = vmatprep.subr.bf16.mxu1 %v4614_v3  ;;  %v4633_v21 = vld [vmem:[%s5751_s0 + $0x90] sm:$0xff]   ;;  %v4634_v22 = vld [vmem:[%s5751_s0 + $0x98] sm:$0xff]   ;;  %v4635_v23 = vld [vmem:[%s5751_s0 + $0xa0] sm:$0xff]  }
   0x9   :  { %v4636_v24 = vld [vmem:[%s5751_s0 + $0xa8] sm:$0xff]   ;;  %v4637_v25 = vld [vmem:[%s5751_s0 + $0xb0] sm:$0xff]   ;;  %v4638_v27 = vld [vmem:[%s5751_s0 + $0xb8] sm:$0xff]  }
   0xa   :  { %v4669_v26 = vld [vmem:[%s5751_s0 + $0x330] sm:$0xff]   ;;  %v4670_v28 = vld [vmem:[%s5751_s0 + $0x338] sm:$0xff]   ;;  %v4639_v29 = vld [vmem:[%s5751_s0 + $0xc0] sm:$0xff]  }
   0xb   :  { %4213 = vmatpush3.bf16.msra.mxu0 %v4614_v3  ;;  %4598 = vmatpush3.bf16.msra.mxu1 %v4614_v3  ;;  %v4673_v30 = vld [vmem:[%s5751_s0 + $0x340] sm:$0xff]   ;;  %v4640_v31 = vld [vmem:[%s5751_s0 + $0xc8] sm:$0xff]   ;;  %v4641_v33 = vld [vmem:[%s5751_s0 + $0xd0] sm:$0xff]  }
   0xc   :  { %4418 = vmatprep.mubr.msk.bf16.mxu1 %vm944_vm0, %v4669_v26  ;;  %v4674_v32 = vld [vmem:[%s5751_s0 + $0x348] sm:$0xff]   ;;  %v4677_v34 = vld [vmem:[%s5751_s0 + $0x350] sm:$0xff]   ;;  %v4678_v35 = vld [vmem:[%s5751_s0 + $0x358] sm:$0xff]  }
   0xd   :  { %v4642_v36 = vld [vmem:[%s5751_s0 + $0xd8] sm:$0xff]   ;;  %v4643_v37 = vld [vmem:[%s5751_s0 + $0xe0] sm:$0xff]   ;;  %v4682_v39 = vld [vmem:[%s5751_s0 + $0x368] sm:$0xff]  }
   0xe   :  { %4215 = vmatmul.mubr.msk.bf16.vlgmr.msra.gmra.mrb[0].mxu0 %vm944_vm0, %v4616_v4  ;;  %4419 = vmatmul.mubr.msk.bf16.vlgmr.msra.gmra.mrb[0].mxu1 %vm944_vm0, %v4670_v28  ;;  %v4681_v38 = vld [vmem:[%s5751_s0 + $0x360] sm:$0xff]   ;;  %v4644_v40 = vld [vmem:[%s5751_s0 + $0xe8] sm:$0xff]   ;;  %v4645_v41 = vld [vmem:[%s5751_s0 + $0xf0] sm:$0xff]  }
   0xf   :  { %4218 = vmatprep.mubr.msk.bf16.mxu0 %vm944_vm0, %v4617_v5  ;;  %4422 = vmatprep.mubr.msk.bf16.mxu1 %vm944_vm0, %v4673_v30  ;;  %v4685_v42 = vld [vmem:[%s5751_s0 + $0x370] sm:$0xff]   ;;  %v4686_v43 = vld [vmem:[%s5751_s0 + $0x378] sm:$0xff]   ;;  %v4647_v45 = vld [vmem:[%s5751_s0 + $0x100] sm:$0xff]  }
  0x10   :  { %v4646_v44 = vld [vmem:[%s5751_s0 + $0xf8] sm:$0xff]   ;;  %v4689_v46 = vld [vmem:[%s5751_s0 + $0x380] sm:$0xff]   ;;  %v4690_v47 = vld [vmem:[%s5751_s0 + $0x388] sm:$0xff]  }
  0x11   :  { %v4648_v48 = vld [vmem:[%s5751_s0 + $0x108] sm:$0xff]   ;;  %v4649_v49 = vld [vmem:[%s5751_s0 + $0x110] sm:$0xff]   ;;  %v4694_v51 = vld [vmem:[%s5751_s0 + $0x398] sm:$0xff]  }
  0x12   :  { %v4693_v50 = vld [vmem:[%s5751_s0 + $0x390] sm:$0xff]   ;;  %v4650_v52 = vld [vmem:[%s5751_s0 + $0x118] sm:$0xff]   ;;  %v4651_v53 = vld [vmem:[%s5751_s0 + $0x120] sm:$0xff]  }
  0x13   :  { %v4697_v54 = vld [vmem:[%s5751_s0 + $0x3a0] sm:$0xff]   ;;  %v4698_v55 = vld [vmem:[%s5751_s0 + $0x3a8] sm:$0xff]   ;;  %v4653_v57 = vld [vmem:[%s5751_s0 + $0x130] sm:$0xff]  }
  0x14   :  { %v4652_v56 = vld [vmem:[%s5751_s0 + $0x128] sm:$0xff]   ;;  %v4701_v58 = vld [vmem:[%s5751_s0 + $0x3b0] sm:$0xff]   ;;  %v4702_v59 = vld [vmem:[%s5751_s0 + $0x3b8] sm:$0xff]  }
  0x15   :  { %v4654_v60 = vld [vmem:[%s5751_s0 + $0x138] sm:$0xff]   ;;  %v4655_v61 = vld [vmem:[%s5751_s0 + $0x140] sm:$0xff]   ;;  %v4706_v63 = vld [vmem:[%s5751_s0 + $0x3c8] sm:$0xff]  }
  0x16   :  { %4219 = vmatmul.mubr.msk.bf16.gmra.mrb[4].mxu0 %vm944_vm0, %v4618_v6  ;;  %4423 = vmatmul.mubr.msk.bf16.gmra.mrb[4].mxu1 %vm944_vm0, %v4674_v32  ;;  %v4705_v62 = vld [vmem:[%s5751_s0 + $0x3c0] sm:$0xff]   ;;  %v4656_v0 = vld [vmem:[%s5751_s0 + $0x148] sm:$0xff]   ;;  %v4657_v1 = vld [vmem:[%s5751_s0 + $0x150] sm:$0xff]  }
  0x17   :  { %4222 = vmatprep.mubr.msk.bf16.mxu0 %vm944_vm0, %v4619_v7  ;;  %4426 = vmatprep.mubr.msk.bf16.mxu1 %vm944_vm0, %v4677_v34  ;;  %v4709_v2 = vld [vmem:[%s5751_s0 + $0x3d0] sm:$0xff]   ;;  %v4710_v3 = vld [vmem:[%s5751_s0 + $0x3d8] sm:$0xff]   ;;  %v4659_v5 = vld [vmem:[%s5751_s0 + $0x160] sm:$0xff]  }
  0x18   :  { %v4658_v4 = vld [vmem:[%s5751_s0 + $0x158] sm:$0xff]   ;;  %v4713_v6 = vld [vmem:[%s5751_s0 + $0x3e0] sm:$0xff]   ;;  %v4714_v7 = vld [vmem:[%s5751_s0 + $0x3e8] sm:$0xff]  }
  0x19   :  { %v4675_v26 = vld [vmem:[%s5751_s0 + $0x1c0] sm:$0xff]  }
  0x1e   :  { %4223 = vmatmul.mubr.msk.bf16.gmra.mrb[8].mxu0 %vm944_vm0, %v4620_v8  ;;  %4427 = vmatmul.mubr.msk.bf16.gmra.mrb[8].mxu1 %vm944_vm0, %v4678_v35  ;;  %v4660_v8 = vld [vmem:[%s5751_s0 + $0x168] sm:$0xff]  }
  0x1f   :  { %4226 = vmatprep.mubr.msk.bf16.mxu0 %vm944_vm0, %v4621_v9  ;;  %4430 = vmatprep.mubr.msk.bf16.mxu1 %vm944_vm0, %v4681_v38  ;;  %v4661_v9 = vld [vmem:[%s5751_s0 + $0x170] sm:$0xff]  }
  0x20   :  { %v4679_v38 = vld [vmem:[%s5751_s0 + $0x1d0] sm:$0xff]  }
  0x26   :  { %4227 = vmatmul.mubr.msk.bf16.gmra.mrb[12].mxu0 %vm944_vm0, %v4622_v10  ;;  %4431 = vmatmul.mubr.msk.bf16.gmra.mrb[12].mxu1 %vm944_vm0, %v4682_v39  ;;  %v4717_v10 = vld [vmem:[%s5751_s0 + $0x3f0] sm:$0xff]  }
  0x27   :  { %4230 = vmatprep.mubr.msk.bf16.mxu0 %vm944_vm0, %v4623_v11  ;;  %4434 = vmatprep.mubr.msk.bf16.mxu1 %vm944_vm0, %v4685_v42  ;;  %v4718_v11 = vld [vmem:[%s5751_s0 + $0x3f8] sm:$0xff]  }
  0x2e   :  { %4231 = vmatmul.mubr.msk.bf16.gmra.mrb[16].mxu0 %vm944_vm0, %v4624_v12  ;;  %4435 = vmatmul.mubr.msk.bf16.gmra.mrb[16].mxu1 %vm944_vm0, %v4686_v43  ;;  %v4662_v12 = vld [vmem:[%s5751_s0 + $0x178] sm:$0xff]  }
  0x2f   :  { %4234 = vmatprep.mubr.msk.bf16.mxu0 %vm944_vm0, %v4625_v13  ;;  %4438 = vmatprep.mubr.msk.bf16.mxu1 %vm944_vm0, %v4689_v46  ;;  %v4663_v13 = vld [vmem:[%s5751_s0 + $0x180] sm:$0xff]  }
  0x36   :  { %4235 = vmatmul.mubr.msk.bf16.gmra.mrb[20].mxu0 %vm944_vm0, %v4626_v14  ;;  %4439 = vmatmul.mubr.msk.bf16.gmra.mrb[20].mxu1 %vm944_vm0, %v4690_v47  ;;  %v5130_v14 = vld [vmem:[%s5752_s2] sm:$0xff] }
  0x37   :  { %4238 = vmatprep.mubr.msk.bf16.mxu0 %vm944_vm0, %v4627_v15  ;;  %4442 = vmatprep.mubr.msk.bf16.mxu1 %vm944_vm0, %v4693_v50  ;;  %v3850_v15 = vcombine.high %v5130_v14, %v5130_v14  ;;  %v4683_v50 = vld [vmem:[%s5751_s0 + $0x1e0] sm:$0xff]  }
  0x3e   :  { %4239 = vmatmul.mubr.msk.bf16.gmra.mrb[24].mxu0 %vm944_vm0, %v4628_v16  ;;  %4443 = vmatmul.mubr.msk.bf16.gmra.mrb[24].mxu1 %vm944_vm0, %v4694_v51  ;;  %v4664_v16 = vld [vmem:[%s5751_s0 + $0x188] sm:$0xff]  }
  0x3f   :  { %4242 = vmatprep.mubr.msk.bf16.mxu0 %vm944_vm0, %v4629_v17  ;;  %4446 = vmatprep.mubr.msk.bf16.mxu1 %vm944_vm0, %v4697_v54  ;;  %v4665_v17 = vld [vmem:[%s5751_s0 + $0x190] sm:$0xff]  }
  0x46   :  { %4243 = vmatmul.mubr.msk.bf16.gmra.mrb[28].mxu0 %vm944_vm0, %v4630_v18  ;;  %4447 = vmatmul.mubr.msk.bf16.gmra.mrb[28].mxu1 %vm944_vm0, %v4698_v55  ;;  %v4666_v18 = vld [vmem:[%s5751_s0 + $0x198] sm:$0xff]  }
  0x47   :  { %4246 = vmatprep.mubr.msk.bf16.mxu0 %vm944_vm0, %v4631_v19  ;;  %4450 = vmatprep.mubr.msk.bf16.mxu1 %vm944_vm0, %v4701_v58  ;;  %v4667_v19 = vld [vmem:[%s5751_s0 + $0x1a0] sm:$0xff]  }
  0x4e   :  { %4247 = vmatmul.mubr.msk.bf16.gmra.mrb[32].mxu0 %vm944_vm0, %v4632_v20  ;;  %4451 = vmatmul.mubr.msk.bf16.gmra.mrb[32].mxu1 %vm944_vm0, %v4702_v59  ;;  %v4668_v20 = vld [vmem:[%s5751_s0 + $0x1a8] sm:$0xff]  }
  0x4f   :  { %4250 = vmatprep.mubr.msk.bf16.mxu0 %vm944_vm0, %v4633_v21  ;;  %4454 = vmatprep.mubr.msk.bf16.mxu1 %vm944_vm0, %v4705_v62  ;;  %v4671_v21 = vld [vmem:[%s5751_s0 + $0x1b0] sm:$0xff]  }
  0x50   :  { %v4687_v62 = vld [vmem:[%s5751_s0 + $0x1f0] sm:$0xff]  }
  0x56   :  { %4251 = vmatmul.mubr.msk.bf16.gmra.mrb[36].mxu0 %vm944_vm0, %v4634_v22  ;;  %4455 = vmatmul.mubr.msk.bf16.gmra.mrb[36].mxu1 %vm944_vm0, %v4706_v63 }
  0x57   :  { %4254 = vmatprep.mubr.msk.bf16.mxu0 %vm944_vm0, %v4635_v23  ;;  %4458 = vmatprep.mubr.msk.bf16.mxu1 %vm944_vm0, %v4709_v2 }
  0x5e   :  { %4255 = vmatmul.mubr.msk.bf16.gmra.mrb[40].mxu0 %vm944_vm0, %v4636_v24  ;;  %4459 = vmatmul.mubr.msk.bf16.gmra.mrb[40].mxu1 %vm944_vm0, %v4710_v3  ;;  %v4672_v24 = vld [vmem:[%s5751_s0 + $0x1b8] sm:$0xff]  }
  0x5f   :  { %4258 = vmatprep.mubr.msk.bf16.mxu0 %vm944_vm0, %v4637_v25  ;;  %4462 = vmatprep.mubr.msk.bf16.mxu1 %vm944_vm0, %v4713_v6 }
  0x66   :  { %4259 = vmatmul.mubr.msk.bf16.gmra.mrb[44].mxu0 %vm944_vm0, %v4638_v27  ;;  %4463 = vmatmul.mubr.msk.bf16.gmra.mrb[44].mxu1 %vm944_vm0, %v4714_v7 }
  0x67   :  { %4262 = vmatprep.mubr.msk.bf16.mxu0 %vm944_vm0, %v4639_v29  ;;  %4466 = vmatprep.mubr.msk.bf16.mxu1 %vm944_vm0, %v4717_v10  ;;  %v4691_v10 = vld [vmem:[%s5751_s0 + $0x200] sm:$0xff]  }
  0x6e   :  { %4263 = vmatmul.mubr.msk.bf16.gmra.mrb[48].mxu0 %vm944_vm0, %v4640_v31  ;;  %4467 = vmatmul.mubr.msk.bf16.gmra.mrb[48].mxu1 %vm944_vm0, %v4718_v11 }
  0x6f   :  { %4266 = vmatprep.mubr.msk.bf16.mxu0 %vm944_vm0, %v4641_v33  ;;  %2866 = vmatprep.mubr.bf16.mxu1 %v3850_v15 }
  0x76   :  { %4267 = vmatmul.mubr.msk.bf16.gmra.mrb[52].mxu0 %vm944_vm0, %v4642_v36  ;;  %v4676_v36 = vld [vmem:[%s5751_s0 + $0x1c8] sm:$0xff]  }
  0x77   :  { %4270 = vmatprep.mubr.msk.bf16.mxu0 %vm944_vm0, %v4643_v37 }
  0x7e   :  { %4271 = vmatmul.mubr.msk.bf16.gmra.mrb[56].mxu0 %vm944_vm0, %v4644_v40 }
  0x7f   :  { %4274 = vmatprep.mubr.msk.bf16.mxu0 %vm944_vm0, %v4645_v41 }
  0x86   :  { %4275 = vmatmul.mubr.msk.bf16.gmra.mrb[60].mxu0 %vm944_vm0, %v4646_v44 }
  0x87   :  { %4278 = vmatprep.mubr.msk.bf16.mxu0 %vm944_vm0, %v4647_v45 }
  0x8e   :  { %4279 = vmatmul.mubr.msk.bf16.gmra.mrb[64].mxu0 %vm944_vm0, %v4648_v48  ;;  %v4680_v48 = vld [vmem:[%s5751_s0 + $0x1d8] sm:$0xff]  }
  0x8f   :  { %4282 = vmatprep.mubr.msk.bf16.mxu0 %vm944_vm0, %v4649_v49 }
  0x96   :  { %4283 = vmatmul.mubr.msk.bf16.gmra.mrb[68].mxu0 %vm944_vm0, %v4650_v52 }
  0x97   :  { %4286 = vmatprep.mubr.msk.bf16.mxu0 %vm944_vm0, %v4651_v53 }
  0x9e   :  { %4287 = vmatmul.mubr.msk.bf16.gmra.mrb[72].mxu0 %vm944_vm0, %v4652_v56 }
  0x9f   :  { %4290 = vmatprep.mubr.msk.bf16.mxu0 %vm944_vm0, %v4653_v57 }
  0xa6   :  { %4291 = vmatmul.mubr.msk.bf16.gmra.mrb[76].mxu0 %vm944_vm0, %v4654_v60  ;;  %v4684_v60 = vld [vmem:[%s5751_s0 + $0x1e8] sm:$0xff]  }
  0xa7   :  { %4294 = vmatprep.mubr.msk.bf16.mxu0 %vm944_vm0, %v4655_v61 }
  0xae   :  { %4295 = vmatmul.mubr.msk.bf16.gmra.mrb[80].mxu0 %vm944_vm0, %v4656_v0 }
  0xaf   :  { %4298 = vmatprep.mubr.msk.bf16.mxu0 %vm944_vm0, %v4657_v1 }
  0xb6   :  { %4299 = vmatmul.mubr.msk.bf16.gmra.mrb[84].mxu0 %vm944_vm0, %v4658_v4 }
  0xb7   :  { %4302 = vmatprep.mubr.msk.bf16.mxu0 %vm944_vm0, %v4659_v5 }
  0xbe   :  { %4303 = vmatmul.mubr.msk.bf16.gmra.mrb[88].mxu0 %vm944_vm0, %v4660_v8  ;;  %v4688_v8 = vld [vmem:[%s5751_s0 + $0x1f8] sm:$0xff]  }
  0xbf   :  { %4306 = vmatprep.mubr.msk.bf16.mxu0 %vm944_vm0, %v4661_v9 }
  0xc6   :  { %4307 = vmatmul.mubr.msk.bf16.gmra.mrb[92].mxu0 %vm944_vm0, %v4662_v12 }
  0xc7   :  { %4310 = vmatprep.mubr.msk.bf16.mxu0 %vm944_vm0, %v4663_v13 }
  0xce   :  { %4311 = vmatmul.mubr.msk.bf16.gmra.mrb[96].mxu0 %vm944_vm0, %v4664_v16 }
  0xcf   :  { %4314 = vmatprep.mubr.msk.bf16.mxu0 %vm944_vm0, %v4665_v17 }
  0xd6   :  { %4315 = vmatmul.mubr.msk.bf16.gmra.mrb[100].mxu0 %vm944_vm0, %v4666_v18 }
  0xd7   :  { %4318 = vmatprep.mubr.msk.bf16.mxu0 %vm944_vm0, %v4667_v19 }
  0xde   :  { %4319 = vmatmul.mubr.msk.bf16.gmra.mrb[104].mxu0 %vm944_vm0, %v4668_v20 }
  0xdf   :  { %4322 = vmatprep.mubr.msk.bf16.mxu0 %vm944_vm0, %v4671_v21  ;;  %v4692_v21 = vld [vmem:[%s5751_s0 + $0x208] sm:$0xff]  }
  0xe1   :  { %v4216_v22 = vpop.f32.mrb[0].mxu0 }
  0xe2   :  { %v1363_v23 = vpop.f32.mrb[1].mxu0  ;;  %v2388_v27 = vmax.f32 %v4216_v22, 0.0 }
  0xe3   :  { %v4217_v25 = vpop.f32.mrb[2].mxu0  ;;  %v2386_v30 = vmax.f32 %v1363_v23, 0.0  ;;  %v4695_v23 = vld [vmem:[%s5751_s0 + $0x210] sm:$0xff]  }
  0xe4   :  { %v2389_v28 = vmax.f32 %v4217_v25, 0.0  ;;  %v1366_v29 = vpop.f32.mrb[3].mxu0 }
  0xe5   :  { %v2387_v31 = vmax.f32 %v1366_v29, 0.0 }
  0xe6   :  { %v5165_v32 = vpack.c.bf16 %v2389_v28, %v2388_v27  ;;  %4323 = vmatmul.mubr.msk.bf16.gmra.mrb[108].mxu0 %vm944_vm0, %v4672_v24 }
  0xe7   :  { %v2650_v33 = vpack.c.bf16 %v2387_v31, %v2386_v30  ;;  %4326 = vmatprep.mubr.msk.bf16.mxu0 %vm944_vm0, %v4675_v26 }
  0xe9   :  { %v4220_v34 = vpop.f32.mrb[4].mxu0 }
  0xea   :  { %v1379_v35 = vpop.f32.mrb[5].mxu0  ;;  %v2392_v39 = vmax.f32 %v4220_v34, 0.0  ;;  %v4696_v34 = vld [vmem:[%s5751_s0 + $0x218] sm:$0xff]  }
  0xeb   :  { %v4221_v37 = vpop.f32.mrb[6].mxu0  ;;  %v2390_v42 = vmax.f32 %v1379_v35, 0.0 }
  0xec   :  { %v2393_v40 = vmax.f32 %v4221_v37, 0.0  ;;  %v1382_v41 = vpop.f32.mrb[7].mxu0 }
  0xed   :  { %v2391_v43 = vmax.f32 %v1382_v41, 0.0 }
  0xee   :  { %v5175_v44 = vpack.c.bf16 %v2393_v40, %v2392_v39  ;;  %4327 = vmatmul.mubr.msk.bf16.gmra.mrb[112].mxu0 %vm944_vm0, %v4676_v36  ;;  %v4699_v36 = vld [vmem:[%s5751_s0 + $0x220] sm:$0xff]  }
  0xef   :  { %v5178_v45 = vpack.c.bf16 %v2391_v43, %v2390_v42  ;;  %4330 = vmatprep.mubr.msk.bf16.mxu0 %vm944_vm0, %v4679_v38 }
  0xf1   :  { %v4224_v46 = vpop.f32.mrb[8].mxu0 }
  0xf2   :  { %v1395_v47 = vpop.f32.mrb[9].mxu0  ;;  %v2396_v51 = vmax.f32 %v4224_v46, 0.0  ;;  %v4700_v46 = vld [vmem:[%s5751_s0 + $0x228] sm:$0xff]  }
  0xf3   :  { %v4225_v49 = vpop.f32.mrb[10].mxu0  ;;  %v2394_v54 = vmax.f32 %v1395_v47, 0.0 }
  0xf4   :  { %v2397_v52 = vmax.f32 %v4225_v49, 0.0  ;;  %v1398_v53 = vpop.f32.mrb[11].mxu0 }
  0xf5   :  { %v2395_v55 = vmax.f32 %v1398_v53, 0.0 }
  0xf6   :  { %v5187_v56 = vpack.c.bf16 %v2397_v52, %v2396_v51  ;;  %4331 = vmatmul.mubr.msk.bf16.gmra.mrb[116].mxu0 %vm944_vm0, %v4680_v48  ;;  %v4703_v48 = vld [vmem:[%s5751_s0 + $0x230] sm:$0xff]  }
  0xf7   :  { %v5190_v57 = vpack.c.bf16 %v2395_v55, %v2394_v54  ;;  %4334 = vmatprep.mubr.msk.bf16.mxu0 %vm944_vm0, %v4683_v50 }
  0xf9   :  { %v4228_v58 = vpop.f32.mrb[12].mxu0 }
  0xfa   :  { %v1411_v59 = vpop.f32.mrb[13].mxu0  ;;  %v2400_v63 = vmax.f32 %v4228_v58, 0.0  ;;  %v4704_v58 = vld [vmem:[%s5751_s0 + $0x238] sm:$0xff]  }
  0xfb   :  { %v4229_v61 = vpop.f32.mrb[14].mxu0  ;;  %v2398_v2 = vmax.f32 %v1411_v59, 0.0 }
  0xfc   :  { %v2401_v0 = vmax.f32 %v4229_v61, 0.0  ;;  %v1414_v1 = vpop.f32.mrb[15].mxu0 }
  0xfd   :  { %v2399_v3 = vmax.f32 %v1414_v1, 0.0 }
  0xfe   :  { %v5199_v4 = vpack.c.bf16 %v2401_v0, %v2400_v63  ;;  %4335 = vmatmul.mubr.msk.bf16.gmra.mrb[120].mxu0 %vm944_vm0, %v4684_v60  ;;  %v4707_v60 = vld [vmem:[%s5751_s0 + $0x240] sm:$0xff]  }
  0xff   :  { %v5202_v5 = vpack.c.bf16 %v2399_v3, %v2398_v2  ;;  %4338 = vmatprep.mubr.msk.bf16.mxu0 %vm944_vm0, %v4687_v62  ;;  %v3849_v2 = vcombine.low %v5130_v14, %v5130_v14 }
 0x101   :  { %v4232_v6 = vpop.f32.mrb[16].mxu0 }
 0x102   :  { %v1427_v7 = vpop.f32.mrb[17].mxu0  ;;  %v2404_v11 = vmax.f32 %v4232_v6, 0.0 }
 0x103   :  { %v4233_v9 = vpop.f32.mrb[18].mxu0  ;;  %v2402_v15 = vmax.f32 %v1427_v7, 0.0 }
 0x104   :  { %v2405_v12 = vmax.f32 %v4233_v9, 0.0  ;;  %v1430_v13 = vpop.f32.mrb[19].mxu0  ;;  %v4708_v9 = vld [vmem:[%s5751_s0 + $0x248] sm:$0xff]  }
 0x105   :  { %v2403_v16 = vmax.f32 %v1430_v13, 0.0 }
 0x106   :  { %v2659_v17 = vpack.c.bf16 %v2405_v12, %v2404_v11  ;;  %4339 = vmatmul.mubr.msk.bf16.gmra.mrb[124].mxu0 %vm944_vm0, %v4688_v8 }
 0x107   :  { %v2658_v18 = vpack.c.bf16 %v2403_v16, %v2402_v15  ;;  %4342 = vmatprep.mubr.msk.bf16.mxu0 %vm944_vm0, %v4691_v10  ;;  %v4711_v10 = vld [vmem:[%s5751_s0 + $0x250] sm:$0xff]  }
 0x109   :  { %v4236_v19 = vpop.f32.mrb[20].mxu0  ;;  %3996 = vmatprep.subr.bf16.mxu1 %v2658_v18 }
 0x10a   :  { %v1443_v20 = vpop.f32.mrb[21].mxu0  ;;  %3997 = vmatpush3.bf16.msra.mxu1 %v2650_v33  ;;  %v2408_v24 = vmax.f32 %v4236_v19, 0.0 }
 0x10b   :  { %v4237_v22 = vpop.f32.mrb[22].mxu0  ;;  %3998 = vmatprep.subr.bf16.mxu1 %v2659_v17  ;;  %v2406_v27 = vmax.f32 %v1443_v20, 0.0  ;;  %v4712_v20 = vld [vmem:[%s5751_s0 + $0x258] sm:$0xff]  }
 0x10c   :  { %v2409_v25 = vmax.f32 %v4237_v22, 0.0  ;;  %v1446_v26 = vpop.f32.mrb[23].mxu0  ;;  %v4715_v22 = vld [vmem:[%s5751_s0 + $0x260] sm:$0xff]  }
 0x10d   :  { %v2407_v28 = vmax.f32 %v1446_v26, 0.0 }
 0x10e   :  { %v2661_v29 = vpack.c.bf16 %v2409_v25, %v2408_v24  ;;  %4343 = vmatmul.mubr.msk.bf16.gmra.mrb[128].mxu0 %vm944_vm0, %v4692_v21  ;;  %3999 = vmatpush3.bf16.msra.mxu1 %v5165_v32 }
 0x10f   :  { %v2660_v30 = vpack.c.bf16 %v2407_v28, %v2406_v27  ;;  %4346 = vmatprep.mubr.msk.bf16.mxu0 %vm944_vm0, %v4695_v23 }
 0x111   :  { %v4240_v31 = vpop.f32.mrb[24].mxu0  ;;  %4000 = vmatprep.subr.bf16.mxu1 %v2660_v30 }
 0x112   :  { %v1459_v33 = vpop.f32.mrb[25].mxu0  ;;  %4001 = vmatpush3.bf16.msra.mxu1 %v5178_v45  ;;  %v2412_v37 = vmax.f32 %v4240_v31, 0.0 }
 0x113   :  { %v4241_v35 = vpop.f32.mrb[26].mxu0  ;;  %4002 = vmatprep.subr.bf16.mxu1 %v2661_v29  ;;  %v2410_v39 = vmax.f32 %v1459_v33, 0.0  ;;  %v4716_v33 = vld [vmem:[%s5751_s0 + $0x268] sm:$0xff]  }
 0x114   :  { %v2413_v32 = vmax.f32 %v4241_v35, 0.0  ;;  %v1462_v38 = vpop.f32.mrb[27].mxu0  ;;  %v4719_v35 = vld [vmem:[%s5751_s0 + $0x270] sm:$0xff]  }
 0x115   :  { %v2411_v40 = vmax.f32 %v1462_v38, 0.0 }
 0x116   :  { %v2663_v41 = vpack.c.bf16 %v2413_v32, %v2412_v37  ;;  %4347 = vmatmul.mubr.msk.bf16.gmra.mrb[132].mxu0 %vm944_vm0, %v4696_v34  ;;  %4003 = vmatpush3.bf16.msra.mxu1 %v5175_v44 }
 0x117   :  { %v2662_v42 = vpack.c.bf16 %v2411_v40, %v2410_v39  ;;  %4350 = vmatprep.mubr.msk.bf16.mxu0 %vm944_vm0, %v4699_v36 }
 0x119   :  { %v4244_v43 = vpop.f32.mrb[28].mxu0  ;;  %4004 = vmatprep.subr.bf16.mxu1 %v2662_v42 }
 0x11a   :  { %v1475_v45 = vpop.f32.mrb[29].mxu0  ;;  %4005 = vmatpush3.bf16.msra.mxu1 %v5190_v57  ;;  %v2416_v49 = vmax.f32 %v4244_v43, 0.0 }
 0x11b   :  { %v4245_v47 = vpop.f32.mrb[30].mxu0  ;;  %4006 = vmatprep.subr.bf16.mxu1 %v2663_v41  ;;  %v2414_v51 = vmax.f32 %v1475_v45, 0.0  ;;  %v4720_v45 = vld [vmem:[%s5751_s0 + $0x278] sm:$0xff]  }
 0x11c   :  { %v2417_v44 = vmax.f32 %v4245_v47, 0.0  ;;  %v1478_v50 = vpop.f32.mrb[31].mxu0  ;;  %v4723_v47 = vld [vmem:[%s5751_s0 + $0x280] sm:$0xff]  }
 0x11d   :  { %v2415_v52 = vmax.f32 %v1478_v50, 0.0 }
 0x11e   :  { %v2665_v53 = vpack.c.bf16 %v2417_v44, %v2416_v49  ;;  %4351 = vmatmul.mubr.msk.bf16.gmra.mrb[136].mxu0 %vm944_vm0, %v4700_v46  ;;  %4007 = vmatpush3.bf16.msra.mxu1 %v5187_v56  ;;  %v5252_v56 = vld [vmem:[%s5752_s2 + $0x8] sm:$0xff] }
 0x11f   :  { %v2664_v54 = vpack.c.bf16 %v2415_v52, %v2414_v51  ;;  %4354 = vmatprep.mubr.msk.bf16.mxu0 %vm944_vm0, %v4703_v48 }
 0x121   :  { %v4248_v55 = vpop.f32.mrb[32].mxu0  ;;  %4008 = vmatprep.subr.bf16.mxu1 %v2664_v54 }
 0x122   :  { %v1491_v57 = vpop.f32.mrb[33].mxu0  ;;  %4009 = vmatpush3.bf16.msra.mxu1 %v5202_v5  ;;  %v2420_v61 = vmax.f32 %v4248_v55, 0.0  ;;  %v3852_v5 = vcombine.high %v5252_v56, %v5252_v56 }
 0x123   :  { %v4249_v59 = vpop.f32.mrb[34].mxu0  ;;  %4010 = vmatprep.subr.bf16.mxu1 %v2665_v53  ;;  %v2418_v0 = vmax.f32 %v1491_v57, 0.0  ;;  %v4724_v57 = vld [vmem:[%s5751_s0 + $0x288] sm:$0xff]  }
 0x124   :  { %v2421_v62 = vmax.f32 %v4249_v59, 0.0  ;;  %v1494_v63 = vpop.f32.mrb[35].mxu0  ;;  %v4725_v59 = vld [vmem:[%s5751_s0 + $0x290] sm:$0xff]  }
 0x125   :  { %v2419_v1 = vmax.f32 %v1494_v63, 0.0 }
 0x126   :  { %v5256_v3 = vpack.c.bf16 %v2421_v62, %v2420_v61  ;;  %4355 = vmatmul.mubr.msk.bf16.gmra.mrb[140].mxu0 %vm944_vm0, %v4704_v58  ;;  %4011 = vmatpush3.bf16.msra.mxu1 %v5199_v4 }
 0x127   :  { %v2666_v6 = vpack.c.bf16 %v2419_v1, %v2418_v0  ;;  %4358 = vmatprep.mubr.msk.bf16.mxu0 %vm944_vm0, %v4707_v60 }
 0x129   :  { %v4252_v7 = vpop.f32.mrb[36].mxu0  ;;  %2867 = vmatmul.mubr.bf16.vlgmr.msra.gmra.mrb[52].mxu1 %v3849_v2 }
 0x12a   :  { %v1507_v8 = vpop.f32.mrb[37].mxu0  ;;  %2906 = vmatprep.mubr.bf16.mxu1 %v3852_v5  ;;  %v2424_v4 = vmax.f32 %v4252_v7, 0.0  ;;  %v4726_v7 = vld [vmem:[%s5751_s0 + $0x298] sm:$0xff]  }
 0x12b   :  { %v4253_v14 = vpop.f32.mrb[38].mxu0  ;;  %v2422_v13 = vmax.f32 %v1507_v8, 0.0 }
 0x12c   :  { %v2425_v11 = vmax.f32 %v4253_v14, 0.0  ;;  %v1510_v12 = vpop.f32.mrb[39].mxu0 }
 0x12d   :  { %v2423_v15 = vmax.f32 %v1510_v12, 0.0 }
 0x12e   :  { %v5269_v16 = vpack.c.bf16 %v2425_v11, %v2424_v4  ;;  %4359 = vmatmul.mubr.msk.bf16.gmra.mrb[144].mxu0 %vm944_vm0, %v4708_v9  ;;  %v4727_v9 = vld [vmem:[%s5751_s0 + $0x2a0] sm:$0xff]  }
 0x12f   :  { %v5272_v17 = vpack.c.bf16 %v2423_v15, %v2422_v13  ;;  %4362 = vmatprep.mubr.msk.bf16.mxu0 %vm944_vm0, %v4711_v10 }
 0x131   :  { %v4256_v18 = vpop.f32.mrb[40].mxu0 }
 0x132   :  { %v1523_v19 = vpop.f32.mrb[41].mxu0  ;;  %v2428_v23 = vmax.f32 %v4256_v18, 0.0  ;;  %v4728_v18 = vld [vmem:[%s5751_s0 + $0x2a8] sm:$0xff]  }
 0x133   :  { %v4257_v21 = vpop.f32.mrb[42].mxu0  ;;  %v2426_v26 = vmax.f32 %v1523_v19, 0.0 }
 0x134   :  { %v2429_v24 = vmax.f32 %v4257_v21, 0.0  ;;  %v1526_v25 = vpop.f32.mrb[43].mxu0 }
 0x135   :  { %v2427_v27 = vmax.f32 %v1526_v25, 0.0 }
 0x136   :  { %v5281_v28 = vpack.c.bf16 %v2429_v24, %v2428_v23  ;;  %4363 = vmatmul.mubr.msk.bf16.gmra.mrb[148].mxu0 %vm944_vm0, %v4712_v20  ;;  %v4729_v20 = vld [vmem:[%s5751_s0 + $0x2b0] sm:$0xff]  }
 0x137   :  { %v5284_v29 = vpack.c.bf16 %v2427_v27, %v2426_v26  ;;  %4366 = vmatprep.mubr.msk.bf16.mxu0 %vm944_vm0, %v4715_v22 }
 0x139   :  { %v4260_v30 = vpop.f32.mrb[44].mxu0 }
 0x13a   :  { %v1539_v31 = vpop.f32.mrb[45].mxu0  ;;  %v2432_v36 = vmax.f32 %v4260_v30, 0.0  ;;  %v4730_v30 = vld [vmem:[%s5751_s0 + $0x2b8] sm:$0xff]  }
 0x13b   :  { %v4261_v34 = vpop.f32.mrb[46].mxu0  ;;  %v2430_v38 = vmax.f32 %v1539_v31, 0.0 }
 0x13c   :  { %v2433_v37 = vmax.f32 %v4261_v34, 0.0  ;;  %v1542_v32 = vpop.f32.mrb[47].mxu0 }
 0x13d   :  { %v2431_v39 = vmax.f32 %v1542_v32, 0.0 }
 0x13e   :  { %v5293_v40 = vpack.c.bf16 %v2433_v37, %v2432_v36  ;;  %4367 = vmatmul.mubr.msk.bf16.gmra.mrb[152].mxu0 %vm944_vm0, %v4716_v33  ;;  %v4731_v33 = vld [vmem:[%s5751_s0 + $0x2c0] sm:$0xff]  }
 0x13f   :  { %v5296_v41 = vpack.c.bf16 %v2431_v39, %v2430_v38  ;;  %4370 = vmatprep.mubr.msk.bf16.mxu0 %vm944_vm0, %v4719_v35  ;;  %v3851_v38 = vcombine.low %v5252_v56, %v5252_v56 }
 0x141   :  { %v4264_v42 = vpop.f32.mrb[48].mxu0 }
 0x142   :  { %v1555_v43 = vpop.f32.mrb[49].mxu0  ;;  %v2436_v48 = vmax.f32 %v4264_v42, 0.0 }
 0x143   :  { %v4265_v46 = vpop.f32.mrb[50].mxu0  ;;  %v2434_v50 = vmax.f32 %v1555_v43, 0.0 }
 0x144   :  { %v2437_v49 = vmax.f32 %v4265_v46, 0.0  ;;  %v1558_v44 = vpop.f32.mrb[51].mxu0  ;;  %v4732_v46 = vld [vmem:[%s5751_s0 + $0x2c8] sm:$0xff]  }
 0x145   :  { %v2435_v51 = vmax.f32 %v1558_v44, 0.0 }
 0x146   :  { %v2675_v52 = vpack.c.bf16 %v2437_v49, %v2436_v48  ;;  %4371 = vmatmul.mubr.msk.bf16.gmra.mrb[156].mxu0 %vm944_vm0, %v4720_v45 }
 0x147   :  { %v2674_v53 = vpack.c.bf16 %v2435_v51, %v2434_v50  ;;  %4374 = vmatprep.mubr.msk.bf16.mxu0 %vm944_vm0, %v4723_v47  ;;  %v4733_v47 = vld [vmem:[%s5751_s0 + $0x2d0] sm:$0xff]  }
 0x149   :  { %v4268_v54 = vpop.f32.mrb[52].mxu0  ;;  %4018 = vmatprep.subr.bf16.mxu1 %v2674_v53 }
 0x14a   :  { %v1571_v55 = vpop.f32.mrb[53].mxu0  ;;  %4019 = vmatpush3.bf16.msra.mxu1 %v2666_v6  ;;  %v2440_v60 = vmax.f32 %v4268_v54, 0.0 }
 0x14b   :  { %v4269_v58 = vpop.f32.mrb[54].mxu0  ;;  %4020 = vmatprep.subr.bf16.mxu1 %v2675_v52  ;;  %v2438_v63 = vmax.f32 %v1571_v55, 0.0  ;;  %v4734_v55 = vld [vmem:[%s5751_s0 + $0x2d8] sm:$0xff]  }
 0x14c   :  { %v2441_v61 = vmax.f32 %v4269_v58, 0.0  ;;  %v1574_v62 = vpop.f32.mrb[55].mxu0  ;;  %v4735_v58 = vld [vmem:[%s5751_s0 + $0x2e0] sm:$0xff]  }
 0x14d   :  { %v2439_v0 = vmax.f32 %v1574_v62, 0.0 }
 0x14e   :  { %v2677_v1 = vpack.c.bf16 %v2441_v61, %v2440_v60  ;;  %4375 = vmatmul.mubr.msk.bf16.gmra.mrb[160].mxu0 %vm944_vm0, %v4724_v57  ;;  %4021 = vmatpush3.bf16.msra.mxu1 %v5256_v3 }
 0x14f   :  { %v2676_v2 = vpack.c.bf16 %v2439_v0, %v2438_v63  ;;  %4378 = vmatprep.mubr.msk.bf16.mxu0 %vm944_vm0, %v4725_v59 }
 0x151   :  { %v4272_v5 = vpop.f32.mrb[56].mxu0  ;;  %4022 = vmatprep.subr.bf16.mxu1 %v2676_v2 }
 0x152   :  { %v1587_v6 = vpop.f32.mrb[57].mxu0  ;;  %4023 = vmatpush3.bf16.msra.mxu1 %v5272_v17  ;;  %v2444_v14 = vmax.f32 %v4272_v5, 0.0 }
 0x153   :  { %v4273_v8 = vpop.f32.mrb[58].mxu0  ;;  %4024 = vmatprep.subr.bf16.mxu1 %v2677_v1  ;;  %v2442_v4 = vmax.f32 %v1587_v6, 0.0  ;;  %v4736_v6 = vld [vmem:[%s5751_s0 + $0x2e8] sm:$0xff]  }
 0x154   :  { %v2445_v3 = vmax.f32 %v4273_v8, 0.0  ;;  %v1590_v10 = vpop.f32.mrb[59].mxu0  ;;  %v4737_v8 = vld [vmem:[%s5751_s0 + $0x2f0] sm:$0xff]  }
 0x155   :  { %v2443_v11 = vmax.f32 %v1590_v10, 0.0 }
 0x156   :  { %v2679_v12 = vpack.c.bf16 %v2445_v3, %v2444_v14  ;;  %4379 = vmatmul.mubr.msk.bf16.gmra.mrb[164].mxu0 %vm944_vm0, %v4726_v7  ;;  %4025 = vmatpush3.bf16.msra.mxu1 %v5269_v16 }
 0x157   :  { %v2678_v13 = vpack.c.bf16 %v2443_v11, %v2442_v4  ;;  %4382 = vmatprep.mubr.msk.bf16.mxu0 %vm944_vm0, %v4727_v9 }
 0x159   :  { %v4276_v15 = vpop.f32.mrb[60].mxu0  ;;  %4026 = vmatprep.subr.bf16.mxu1 %v2678_v13 }
 0x15a   :  { %v1603_v17 = vpop.f32.mrb[61].mxu0  ;;  %4027 = vmatpush3.bf16.msra.mxu1 %v5284_v29  ;;  %v2448_v21 = vmax.f32 %v4276_v15, 0.0 }
 0x15b   :  { %v4277_v19 = vpop.f32.mrb[62].mxu0  ;;  %4028 = vmatprep.subr.bf16.mxu1 %v2679_v12  ;;  %v2446_v23 = vmax.f32 %v1603_v17, 0.0  ;;  %v4738_v17 = vld [vmem:[%s5751_s0 + $0x2f8] sm:$0xff]  }
 0x15c   :  { %v2449_v16 = vmax.f32 %v4277_v19, 0.0  ;;  %v1606_v22 = vpop.f32.mrb[63].mxu0  ;;  %v4741_v19 = vld [vmem:[%s5751_s0 + $0x300] sm:$0xff]  }
 0x15d   :  { %v2447_v24 = vmax.f32 %v1606_v22, 0.0 }
 0x15e   :  { %v2681_v25 = vpack.c.bf16 %v2449_v16, %v2448_v21  ;;  %4383 = vmatmul.mubr.msk.bf16.gmra.mrb[168].mxu0 %vm944_vm0, %v4728_v18  ;;  %4029 = vmatpush3.bf16.msra.mxu1 %v5281_v28  ;;  %v5346_v28 = vld [vmem:[%s5752_s2 + $0x10] sm:$0xff] }
 0x15f   :  { %v2680_v26 = vpack.c.bf16 %v2447_v24, %v2446_v23  ;;  %4386 = vmatprep.mubr.msk.bf16.mxu0 %vm944_vm0, %v4729_v20 }
 0x161   :  { %v4280_v27 = vpop.f32.mrb[64].mxu0  ;;  %4030 = vmatprep.subr.bf16.mxu1 %v2680_v26 }
 0x162   :  { %v1619_v29 = vpop.f32.mrb[65].mxu0  ;;  %4031 = vmatpush3.bf16.msra.mxu1 %v5296_v41  ;;  %v2452_v34 = vmax.f32 %v4280_v27, 0.0  ;;  %v3854_v41 = vcombine.high %v5346_v28, %v5346_v28 }
 0x163   :  { %v4281_v31 = vpop.f32.mrb[66].mxu0  ;;  %4032 = vmatprep.subr.bf16.mxu1 %v2681_v25  ;;  %v2450_v37 = vmax.f32 %v1619_v29, 0.0  ;;  %v4742_v29 = vld [vmem:[%s5751_s0 + $0x308] sm:$0xff]  }
 0x164   :  { %v2453_v35 = vmax.f32 %v4281_v31, 0.0  ;;  %v1622_v36 = vpop.f32.mrb[67].mxu0  ;;  %v4743_v31 = vld [vmem:[%s5751_s0 + $0x310] sm:$0xff]  }
 0x165   :  { %v2451_v32 = vmax.f32 %v1622_v36, 0.0 }
 0x166   :  { %v5350_v39 = vpack.c.bf16 %v2453_v35, %v2452_v34  ;;  %4387 = vmatmul.mubr.msk.bf16.gmra.mrb[172].mxu0 %vm944_vm0, %v4730_v30  ;;  %4033 = vmatpush3.bf16.msra.mxu1 %v5293_v40 }
 0x167   :  { %v2682_v42 = vpack.c.bf16 %v2451_v32, %v2450_v37  ;;  %4390 = vmatprep.mubr.msk.bf16.mxu0 %vm944_vm0, %v4731_v33 }
 0x169   :  { %v4284_v43 = vpop.f32.mrb[68].mxu0  ;;  %2907 = vmatmul.mubr.bf16.vlgmr.msra.gmra.mrb[56].mxu1 %v3851_v38 }
 0x16a   :  { %v1635_v45 = vpop.f32.mrb[69].mxu0  ;;  %2946 = vmatprep.mubr.bf16.mxu1 %v3854_v41  ;;  %v2456_v40 = vmax.f32 %v4284_v43, 0.0  ;;  %v4744_v43 = vld [vmem:[%s5751_s0 + $0x318] sm:$0xff]  }
 0x16b   :  { %v4285_v56 = vpop.f32.mrb[70].mxu0  ;;  %v2454_v44 = vmax.f32 %v1635_v45, 0.0 }
 0x16c   :  { %v2457_v48 = vmax.f32 %v4285_v56, 0.0  ;;  %v1638_v49 = vpop.f32.mrb[71].mxu0 }
 0x16d   :  { %v2455_v50 = vmax.f32 %v1638_v49, 0.0 }
 0x16e   :  { %v5363_v51 = vpack.c.bf16 %v2457_v48, %v2456_v40  ;;  %4391 = vmatmul.mubr.msk.bf16.gmra.mrb[176].mxu0 %vm944_vm0, %v4732_v46  ;;  %v4745_v46 = vld [vmem:[%s5751_s0 + $0x320] sm:$0xff]  }
 0x16f   :  { %v5366_v52 = vpack.c.bf16 %v2455_v50, %v2454_v44  ;;  %4394 = vmatprep.mubr.msk.bf16.mxu0 %vm944_vm0, %v4733_v47 }
 0x171   :  { %v4288_v53 = vpop.f32.mrb[72].mxu0 }
 0x172   :  { %v1651_v54 = vpop.f32.mrb[73].mxu0  ;;  %v2460_v59 = vmax.f32 %v4288_v53, 0.0  ;;  %v4746_v53 = vld [vmem:[%s5751_s0 + $0x328] sm:$0xff]  }
 0x173   :  { %v4289_v57 = vpop.f32.mrb[74].mxu0  ;;  %v2458_v62 = vmax.f32 %v1651_v54, 0.0 }
 0x174   :  { %v2461_v60 = vmax.f32 %v4289_v57, 0.0  ;;  %v1654_v61 = vpop.f32.mrb[75].mxu0 }
 0x175   :  { %v2459_v63 = vmax.f32 %v1654_v61, 0.0 }
 0x176   :  { %v5375_v0 = vpack.c.bf16 %v2461_v60, %v2460_v59  ;;  %4395 = vmatmul.mubr.msk.bf16.gmra.mrb[180].mxu0 %vm944_vm0, %v4734_v55 }
 0x177   :  { %v5378_v1 = vpack.c.bf16 %v2459_v63, %v2458_v62  ;;  %4398 = vmatprep.mubr.msk.bf16.mxu0 %vm944_vm0, %v4735_v58 }
 0x179   :  { %v4292_v2 = vpop.f32.mrb[76].mxu0 }
 0x17a   :  { %v1667_v5 = vpop.f32.mrb[77].mxu0  ;;  %v2464_v9 = vmax.f32 %v4292_v2, 0.0  ;;  %v5430_v2 = vld [vmem:[%s5752_s2 + $0x18] sm:$0xff] }
 0x17b   :  { %v4293_v7 = vpop.f32.mrb[78].mxu0  ;;  %v2462_v10 = vmax.f32 %v1667_v5, 0.0 }
 0x17c   :  { %v2465_v14 = vmax.f32 %v4293_v7, 0.0  ;;  %v1670_v3 = vpop.f32.mrb[79].mxu0 }
 0x17d   :  { %v2463_v4 = vmax.f32 %v1670_v3, 0.0  ;;  %v3856_v3 = vcombine.high %v5430_v2, %v5430_v2 }
 0x17e   :  { %v5387_v11 = vpack.c.bf16 %v2465_v14, %v2464_v9  ;;  %4399 = vmatmul.mubr.msk.bf16.gmra.mrb[184].mxu0 %vm944_vm0, %v4736_v6 }
 0x17f   :  { %v5390_v12 = vpack.c.bf16 %v2463_v4, %v2462_v10  ;;  %4402 = vmatprep.mubr.msk.bf16.mxu0 %vm944_vm0, %v4737_v8 }
 0x181   :  { %v4296_v13 = vpop.f32.mrb[80].mxu0 }
 0x182   :  { %v1683_v15 = vpop.f32.mrb[81].mxu0  ;;  %v2468_v20 = vmax.f32 %v4296_v13, 0.0 }
 0x183   :  { %v4297_v18 = vpop.f32.mrb[82].mxu0  ;;  %v2466_v22 = vmax.f32 %v1683_v15, 0.0 }
 0x184   :  { %v2469_v21 = vmax.f32 %v4297_v18, 0.0  ;;  %v1686_v16 = vpop.f32.mrb[83].mxu0 }
 0x185   :  { %v2467_v23 = vmax.f32 %v1686_v16, 0.0 }
 0x186   :  { %v2691_v24 = vpack.c.bf16 %v2469_v21, %v2468_v20  ;;  %4403 = vmatmul.mubr.msk.bf16.gmra.mrb[188].mxu0 %vm944_vm0, %v4738_v17 }
 0x187   :  { %v2690_v25 = vpack.c.bf16 %v2467_v23, %v2466_v22  ;;  %4406 = vmatprep.mubr.msk.bf16.mxu0 %vm944_vm0, %v4741_v19  ;;  %v4420_v22 = vpop.f32.mrb[0].mxu1 }
 0x189   :  { %v4300_v26 = vpop.f32.mrb[84].mxu0  ;;  %4040 = vmatprep.subr.bf16.mxu1 %v2690_v25 }
 0x18a   :  { %v1699_v27 = vpop.f32.mrb[85].mxu0  ;;  %4041 = vmatpush3.bf16.msra.mxu1 %v2682_v42  ;;  %v2472_v33 = vmax.f32 %v4300_v26, 0.0 }
 0x18b   :  { %v4301_v30 = vpop.f32.mrb[86].mxu0  ;;  %4042 = vmatprep.subr.bf16.mxu1 %v2691_v24  ;;  %v2470_v36 = vmax.f32 %v1699_v27, 0.0  ;;  %v2179_v24 = vpop.f32.mrb[1].mxu1 }
 0x18c   :  { %v2473_v34 = vmax.f32 %v4301_v30, 0.0  ;;  %v1702_v35 = vpop.f32.mrb[87].mxu0  ;;  %v4421_v30 = vpop.f32.mrb[2].mxu1 }
 0x18d   :  { %v2471_v37 = vmax.f32 %v1702_v35, 0.0 }
 0x18e   :  { %v2693_v32 = vpack.c.bf16 %v2473_v34, %v2472_v33  ;;  %4407 = vmatmul.mubr.msk.bf16.gmra.mrb[192].mxu0 %vm944_vm0, %v4742_v29  ;;  %4043 = vmatpush3.bf16.msra.mxu1 %v5350_v39  ;;  %v2592_v29 = vmax.f32 %v4420_v22, 0.0  ;;  %v2182_v34 = vpop.f32.mrb[3].mxu1 }
 0x18f   :  { %v2692_v38 = vpack.c.bf16 %v2471_v37, %v2470_v36  ;;  %4410 = vmatprep.mubr.msk.bf16.mxu0 %vm944_vm0, %v4743_v31  ;;  %v2590_v36 = vmax.f32 %v2179_v24, 0.0  ;;  %v2593_v37 = vmax.f32 %v4421_v30, 0.0 }
 0x191   :  { %v4304_v41 = vpop.f32.mrb[88].mxu0  ;;  %4044 = vmatprep.subr.bf16.mxu1 %v2692_v38 }
 0x192   :  { %v1715_v42 = vpop.f32.mrb[89].mxu0  ;;  %4045 = vmatpush3.bf16.msra.mxu1 %v5366_v52  ;;  %v2476_v56 = vmax.f32 %v4304_v41, 0.0  ;;  %v5449_v41 = vpack.c.bf16 %v2593_v37, %v2592_v29 }
 0x193   :  { %v4305_v45 = vpop.f32.mrb[90].mxu0  ;;  %4046 = vmatprep.subr.bf16.mxu1 %v2693_v32  ;;  %v2474_v40 = vmax.f32 %v1715_v42, 0.0  ;;  %v2591_v32 = vmax.f32 %v2182_v34, 0.0 }
 0x194   :  { %v2477_v39 = vmax.f32 %v4305_v45, 0.0  ;;  %v1718_v47 = vpop.f32.mrb[91].mxu0 }
 0x195   :  { %v2475_v48 = vmax.f32 %v1718_v47, 0.0  ;;  %v5451_v42 = vpack.c.bf16 %v2591_v32, %v2590_v36 }
 0x196   :  { %v2695_v49 = vpack.c.bf16 %v2477_v39, %v2476_v56  ;;  %4411 = vmatmul.mubr.msk.bf16.gmra.mrb[196].mxu0 %vm944_vm0, %v4744_v43  ;;  %4047 = vmatpush3.bf16.msra.mxu1 %v5363_v51 }
 0x197   :  { %v2694_v44 = vpack.c.bf16 %v2475_v48, %v2474_v40  ;;  %4414 = vmatprep.mubr.msk.bf16.mxu0 %vm944_vm0, %v4745_v46  ;;  %v4424_v46 = vpop.f32.mrb[4].mxu1 }
 0x198   :  { %v2195_v39 = vpop.f32.mrb[5].mxu1 }
 0x199   :  { %v4308_v50 = vpop.f32.mrb[92].mxu0  ;;  %4048 = vmatprep.subr.bf16.mxu1 %v2694_v44  ;;  %v4425_v44 = vpop.f32.mrb[6].mxu1 }
 0x19a   :  { %v1731_v52 = vpop.f32.mrb[93].mxu0  ;;  %4049 = vmatpush3.bf16.msra.mxu1 %v5378_v1  ;;  %v2480_v55 = vmax.f32 %v4308_v50, 0.0 }
 0x19b   :  { %v4309_v54 = vpop.f32.mrb[94].mxu0  ;;  %4050 = vmatprep.subr.bf16.mxu1 %v2695_v49  ;;  %v2478_v59 = vmax.f32 %v1731_v52, 0.0  ;;  %v2596_v49 = vmax.f32 %v4424_v46, 0.0 }
 0x19c   :  { %v2481_v57 = vmax.f32 %v4309_v54, 0.0  ;;  %v1734_v58 = vpop.f32.mrb[95].mxu0 }
 0x19d   :  { %v2479_v60 = vmax.f32 %v1734_v58, 0.0 }
 0x19e   :  { %v2697_v51 = vpack.c.bf16 %v2481_v57, %v2480_v55  ;;  %4415 = vmatmul.mubr.msk.bf16.gmra.mrb[200].mxu0 %vm944_vm0, %v4746_v53  ;;  %4051 = vmatpush3.bf16.msra.mxu1 %v5375_v0  ;;  %v3853_v0 = vcombine.low %v5346_v28, %v5346_v28  ;;  %v2198_v53 = vpop.f32.mrb[7].mxu1  ;;  %v2594_v55 = vmax.f32 %v2195_v39, 0.0  ;;  %v2597_v57 = vmax.f32 %v4425_v44, 0.0 }
 0x19f   :  { %v2696_v61 = vpack.c.bf16 %v2479_v60, %v2478_v59  ;;  %v2595_v58 = vmax.f32 %v2198_v53, 0.0 }
 0x1a0   :  { %v5457_v60 = vpack.c.bf16 %v2597_v57, %v2596_v49 }
 0x1a1   :  { %v4312_v62 = vpop.f32.mrb[96].mxu0  ;;  %4052 = vmatprep.subr.bf16.mxu1 %v2696_v61 }
 0x1a2   :  { %v1747_v63 = vpop.f32.mrb[97].mxu0  ;;  %4053 = vmatpush3.bf16.msra.mxu1 %v5390_v12  ;;  %v2484_v5 = vmax.f32 %v4312_v62, 0.0 }
 0x1a3   :  { %v4313_v1 = vpop.f32.mrb[98].mxu0  ;;  %4054 = vmatprep.subr.bf16.mxu1 %v2697_v51  ;;  %v2482_v8 = vmax.f32 %v1747_v63, 0.0  ;;  %v5459_v51 = vpack.c.bf16 %v2595_v58, %v2594_v55  ;;  %v4428_v63 = vpop.f32.mrb[8].mxu1 }
 0x1a4   :  { %v2485_v6 = vmax.f32 %v4313_v1, 0.0  ;;  %v1750_v7 = vpop.f32.mrb[99].mxu0 }
 0x1a5   :  { %v2483_v9 = vmax.f32 %v1750_v7, 0.0 }
 0x1a6   :  { %v5434_v14 = vpack.c.bf16 %v2485_v6, %v2484_v5  ;;  %4055 = vmatpush3.bf16.msra.mxu1 %v5387_v11  ;;  %v2211_v5 = vpop.f32.mrb[9].mxu1 }
 0x1a7   :  { %v5439_v10 = vpack.c.bf16 %v2483_v9, %v2482_v8  ;;  %v2600_v9 = vmax.f32 %v4428_v63, 0.0 }
 0x1a9   :  { %v4316_v4 = vpop.f32.mrb[100].mxu0  ;;  %2947 = vmatmul.mubr.bf16.vlgmr.msra.gmra.mrb[60].mxu1 %v3853_v0  ;;  %v4429_v0 = vpop.f32.mrb[10].mxu1 }
 0x1aa   :  { %v1763_v12 = vpop.f32.mrb[101].mxu0  ;;  %2986 = vmatprep.mubr.bf16.mxu1 %v3856_v3  ;;  %v2488_v15 = vmax.f32 %v4316_v4, 0.0 }
 0x1ab   :  { %v4317_v13 = vpop.f32.mrb[102].mxu0  ;;  %v2486_v19 = vmax.f32 %v1763_v12, 0.0  ;;  %v2214_v12 = vpop.f32.mrb[11].mxu1 }
 0x1ac   :  { %v2489_v17 = vmax.f32 %v4317_v13, 0.0  ;;  %v1766_v18 = vpop.f32.mrb[103].mxu0 }
 0x1ad   :  { %v2487_v20 = vmax.f32 %v1766_v18, 0.0  ;;  %v2599_v18 = vmax.f32 %v2214_v12, 0.0 }
 0x1ae   :  { %v5441_v28 = vpack.c.bf16 %v2489_v17, %v2488_v15  ;;  %v2598_v15 = vmax.f32 %v2211_v5, 0.0  ;;  %v2601_v17 = vmax.f32 %v4429_v0, 0.0 }
 0x1af   :  { %v5443_v21 = vpack.c.bf16 %v2487_v20, %v2486_v19 }
 0x1b0   :  { %v5461_v20 = vpack.c.bf16 %v2601_v17, %v2600_v9 }
 0x1b1   :  { %v4320_v11 = vpop.f32.mrb[104].mxu0 }
 0x1b2   :  { %v1779_v16 = vpop.f32.mrb[105].mxu0  ;;  %v2492_v25 = vmax.f32 %v4320_v11, 0.0  ;;  %v5463_v11 = vpack.c.bf16 %v2599_v18, %v2598_v15 }
 0x1b3   :  { %v4321_v23 = vpop.f32.mrb[106].mxu0  ;;  %v2490_v31 = vmax.f32 %v1779_v16, 0.0 }
 0x1b4   :  { %v2493_v26 = vmax.f32 %v4321_v23, 0.0  ;;  %v1782_v27 = vpop.f32.mrb[107].mxu0  ;;  %v4432_v23 = vpop.f32.mrb[12].mxu1 }
 0x1b5   :  { %v2491_v33 = vmax.f32 %v1782_v27, 0.0  ;;  %v2604_v30 = vmax.f32 %v4432_v23, 0.0 }
 0x1b6   :  { %v5445_v35 = vpack.c.bf16 %v2493_v26, %v2492_v25  ;;  %v2227_v25 = vpop.f32.mrb[13].mxu1 }
 0x1b7   :  { %v5447_v38 = vpack.c.bf16 %v2491_v33, %v2490_v31  ;;  %v4433_v31 = vpop.f32.mrb[14].mxu1  ;;  %v2602_v32 = vmax.f32 %v2227_v25, 0.0 }
 0x1b8   :  { %v2230_v36 = vpop.f32.mrb[15].mxu1 }
 0x1b9   :  { %v4324_v43 = vpop.f32.mrb[108].mxu0 }
 0x1ba   :  { %v1795_v45 = vpop.f32.mrb[109].mxu0  ;;  %v2496_v47 = vmax.f32 %v4324_v43, 0.0  ;;  %v2605_v43 = vmax.f32 %v4433_v31, 0.0 }
 0x1bb   :  { %v4325_v56 = vpop.f32.mrb[110].mxu0  ;;  %v2494_v50 = vmax.f32 %v1795_v45, 0.0  ;;  %v2603_v45 = vmax.f32 %v2230_v36, 0.0 }
 0x1bc   :  { %v2497_v40 = vmax.f32 %v4325_v56, 0.0  ;;  %v1798_v48 = vpop.f32.mrb[111].mxu0 }
 0x1bd   :  { %v2495_v52 = vmax.f32 %v1798_v48, 0.0  ;;  %v5469_v56 = vpack.c.bf16 %v2603_v45, %v2602_v32 }
 0x1be   :  { %v5453_v54 = vpack.c.bf16 %v2497_v40, %v2496_v47  ;;  %v4436_v40 = vpop.f32.mrb[16].mxu1 }
 0x1bf   :  { %v5455_v59 = vpack.c.bf16 %v2495_v52, %v2494_v50  ;;  %v2243_v49 = vpop.f32.mrb[17].mxu1  ;;  %v2608_v52 = vmax.f32 %v4436_v40, 0.0 }
 0x1c0   :  { %v4437_v53 = vpop.f32.mrb[18].mxu1 }
 0x1c1   :  { %v4328_v61 = vpop.f32.mrb[112].mxu0  ;;  %v2246_v58 = vpop.f32.mrb[19].mxu1  ;;  %v2609_v63 = vmax.f32 %v4437_v53, 0.0 }
 0x1c2   :  { %v1811_v62 = vpop.f32.mrb[113].mxu0  ;;  %v2500_v6 = vmax.f32 %v4328_v61, 0.0  ;;  %v4440_v9 = vpop.f32.mrb[20].mxu1 }
 0x1c3   :  { %v4329_v1 = vpop.f32.mrb[114].mxu0  ;;  %v2498_v3 = vmax.f32 %v1811_v62, 0.0  ;;  %v2606_v62 = vmax.f32 %v2243_v49, 0.0 }
 0x1c4   :  { %v2501_v7 = vmax.f32 %v4329_v1, 0.0  ;;  %v1814_v8 = vpop.f32.mrb[115].mxu0  ;;  %v2607_v1 = vmax.f32 %v2246_v58, 0.0 }
 0x1c5   :  { %v2499_v4 = vmax.f32 %v1814_v8, 0.0 }
 0x1c6   :  { %v2707_v13 = vpack.c.bf16 %v2501_v7, %v2500_v6  ;;  %v5475_v6 = vpack.c.bf16 %v2607_v1, %v2606_v62 }
 0x1c7   :  { %v2706_v19 = vpack.c.bf16 %v2499_v4, %v2498_v3  ;;  %v2259_v3 = vpop.f32.mrb[21].mxu1 }
 0x1c8   :  { %v4441_v15 = vpop.f32.mrb[22].mxu1 }
 0x1c9   :  { %v4332_v16 = vpop.f32.mrb[116].mxu0  ;;  %4062 = vmatprep.subr.bf16.mxu1 %v2706_v19  ;;  %v2262_v19 = vpop.f32.mrb[23].mxu1  ;;  %v2613_v23 = vmax.f32 %v4441_v15, 0.0 }
 0x1ca   :  { %v1827_v22 = vpop.f32.mrb[117].mxu0  ;;  %4063 = vmatpush3.bf16.msra.mxu1 %v5439_v10  ;;  %v2504_v26 = vmax.f32 %v4332_v16, 0.0  ;;  %v5467_v10 = vpack.c.bf16 %v2605_v43, %v2604_v30  ;;  %v5487_v30 = vld [vmem:[%s5752_s2 + $0x20] sm:$0xff]  ;;  %v4444_v31 = vpop.f32.mrb[24].mxu1 }
 0x1cb   :  { %v4333_v24 = vpop.f32.mrb[118].mxu0  ;;  %4064 = vmatprep.subr.bf16.mxu1 %v2707_v13  ;;  %v2502_v33 = vmax.f32 %v1827_v22, 0.0  ;;  %v2612_v13 = vmax.f32 %v4440_v9, 0.0  ;;  %v2610_v22 = vmax.f32 %v2259_v3, 0.0  ;;  %v2616_v32 = vmax.f32 %v4444_v31, 0.0 }
 0x1cc   :  { %v2505_v27 = vmax.f32 %v4333_v24, 0.0  ;;  %v1830_v29 = vpop.f32.mrb[119].mxu0  ;;  %v2611_v24 = vmax.f32 %v2262_v19, 0.0 }
 0x1cd   :  { %v2503_v34 = vmax.f32 %v1830_v29, 0.0 }
 0x1ce   :  { %v2709_v37 = vpack.c.bf16 %v2505_v27, %v2504_v26  ;;  %4065 = vmatpush3.bf16.msra.mxu1 %v5434_v14  ;;  %v5481_v26 = vpack.c.bf16 %v2611_v24, %v2610_v22 }
 0x1cf   :  { %v2708_v46 = vpack.c.bf16 %v2503_v34, %v2502_v33  ;;  %v2275_v33 = vpop.f32.mrb[25].mxu1 }
 0x1d0   :  { %v4445_v43 = vpop.f32.mrb[26].mxu1 }
 0x1d1   :  { %v4336_v39 = vpop.f32.mrb[120].mxu0  ;;  %4066 = vmatprep.subr.bf16.mxu1 %v2708_v46  ;;  %v2617_v49 = vmax.f32 %v4445_v43, 0.0 }
 0x1d2   :  { %v1843_v47 = vpop.f32.mrb[121].mxu0  ;;  %4067 = vmatpush3.bf16.msra.mxu1 %v5443_v21  ;;  %v2508_v44 = vmax.f32 %v4336_v39, 0.0  ;;  %v5473_v21 = vpack.c.bf16 %v2609_v63, %v2608_v52  ;;  %v3855_v39 = vcombine.low %v5430_v2, %v5430_v2 }
 0x1d3   :  { %v4337_v48 = vpop.f32.mrb[122].mxu0  ;;  %4068 = vmatprep.subr.bf16.mxu1 %v2709_v37  ;;  %v2506_v55 = vmax.f32 %v1843_v47, 0.0  ;;  %v2278_v47 = vpop.f32.mrb[27].mxu1 }
 0x1d4   :  { %v2509_v50 = vmax.f32 %v4337_v48, 0.0  ;;  %v1846_v14 = vpop.f32.mrb[123].mxu0  ;;  %v2614_v48 = vmax.f32 %v2275_v33, 0.0 }
 0x1d5   :  { %v2507_v57 = vmax.f32 %v1846_v14, 0.0  ;;  %v5498_v14 = vpack.c.bf16 %v2617_v49, %v2616_v32 }
 0x1d6   :  { %v2711_v61 = vpack.c.bf16 %v2509_v50, %v2508_v44  ;;  %4069 = vmatpush3.bf16.msra.mxu1 %v5441_v28  ;;  %v2615_v44 = vmax.f32 %v2278_v47, 0.0 }
 0x1d7   :  { %v2710_v5 = vpack.c.bf16 %v2507_v57, %v2506_v55  ;;  %v4448_v55 = vpop.f32.mrb[28].mxu1 }
 0x1d8   :  { %v5500_v52 = vpack.c.bf16 %v2615_v44, %v2614_v48  ;;  %v2291_v58 = vpop.f32.mrb[29].mxu1 }
 0x1d9   :  { %v4340_v7 = vpop.f32.mrb[124].mxu0  ;;  %4070 = vmatprep.subr.bf16.mxu1 %v2710_v5  ;;  %v4449_v1 = vpop.f32.mrb[30].mxu1 }
 0x1da   :  { %v1859_v8 = vpop.f32.mrb[125].mxu0  ;;  %4071 = vmatpush3.bf16.msra.mxu1 %v5447_v38  ;;  %v2512_v4 = vmax.f32 %v4340_v7, 0.0  ;;  %v5479_v38 = vpack.c.bf16 %v2613_v23, %v2612_v13  ;;  %v2621_v3 = vmax.f32 %v4449_v1, 0.0 }
 0x1db   :  { %v4341_v0 = vpop.f32.mrb[126].mxu0  ;;  %4072 = vmatprep.subr.bf16.mxu1 %v2711_v61  ;;  %v2510_v17 = vmax.f32 %v1859_v8, 0.0  ;;  %v2294_v8 = vpop.f32.mrb[31].mxu1 }
 0x1dc   :  { %v2513_v12 = vmax.f32 %v4341_v0, 0.0  ;;  %v1862_v28 = vpop.f32.mrb[127].mxu0  ;;  %v2618_v0 = vmax.f32 %v2291_v58, 0.0 }
 0x1dd   :  { %v2511_v18 = vmax.f32 %v1862_v28, 0.0 }
 0x1de   :  { %v2713_v16 = vpack.c.bf16 %v2513_v12, %v2512_v4  ;;  %4073 = vmatpush3.bf16.msra.mxu1 %v5445_v35  ;;  %v2619_v4 = vmax.f32 %v2294_v8, 0.0 }
 0x1df   :  { %v2712_v25 = vpack.c.bf16 %v2511_v18, %v2510_v17  ;;  %v4452_v18 = vpop.f32.mrb[32].mxu1 }
 0x1e0   :  { %v5508_v13 = vpack.c.bf16 %v2619_v4, %v2618_v0 }
 0x1e1   :  { %v4344_v27 = vpop.f32.mrb[128].mxu0  ;;  %4074 = vmatprep.subr.bf16.mxu1 %v2712_v25  ;;  %v2624_v25 = vmax.f32 %v4452_v18, 0.0 }
 0x1e2   :  { %v1875_v29 = vpop.f32.mrb[129].mxu0  ;;  %4075 = vmatpush3.bf16.msra.mxu1 %v5455_v59  ;;  %v2516_v34 = vmax.f32 %v4344_v27, 0.0  ;;  %v3858_v59 = vcombine.high %v5487_v30, %v5487_v30 }
 0x1e3   :  { %v4345_v35 = vpop.f32.mrb[130].mxu0  ;;  %4076 = vmatprep.subr.bf16.mxu1 %v2713_v16  ;;  %v2514_v45 = vmax.f32 %v1875_v29, 0.0  ;;  %v2307_v16 = vpop.f32.mrb[33].mxu1 }
 0x1e4   :  { %v2517_v36 = vmax.f32 %v4345_v35, 0.0  ;;  %v1878_v37 = vpop.f32.mrb[131].mxu0  ;;  %v4453_v27 = vpop.f32.mrb[34].mxu1 }
 0x1e5   :  { %v2515_v46 = vmax.f32 %v1878_v37, 0.0  ;;  %v2310_v35 = vpop.f32.mrb[35].mxu1 }
 0x1e6   :  { %v5493_v40 = vpack.c.bf16 %v2517_v36, %v2516_v34  ;;  %4077 = vmatpush3.bf16.msra.mxu1 %v5453_v54  ;;  %v2620_v54 = vmax.f32 %v4448_v55, 0.0  ;;  %v2622_v34 = vmax.f32 %v2307_v16, 0.0  ;;  %v2625_v36 = vmax.f32 %v4453_v27, 0.0  ;;  %v4456_v43 = vpop.f32.mrb[36].mxu1 }
 0x1e7   :  { %v5496_v50 = vpack.c.bf16 %v2515_v46, %v2514_v45  ;;  %v2623_v37 = vmax.f32 %v2310_v35, 0.0  ;;  %v2628_v47 = vmax.f32 %v4456_v43, 0.0  ;;  %v2323_v48 = vpop.f32.mrb[37].mxu1 }
 0x1e8   :  { %v5506_v28 = vpack.c.bf16 %v2621_v3, %v2620_v54  ;;  %v5514_v45 = vpack.c.bf16 %v2625_v36, %v2624_v25  ;;  %v2626_v44 = vmax.f32 %v2323_v48, 0.0 }
 0x1e9   :  { %v4348_v53 = vpop.f32.mrb[132].mxu0  ;;  %2987 = vmatmul.mubr.bf16.vlgmr.msra.gmra.mrb[64].mxu1 %v3855_v39  ;;  %v5516_v46 = vpack.c.bf16 %v2623_v37, %v2622_v34 }
 0x1ea   :  { %v1891_v2 = vpop.f32.mrb[133].mxu0  ;;  %3026 = vmatprep.mubr.bf16.mxu1 %v3858_v59  ;;  %v2520_v61 = vmax.f32 %v4348_v53, 0.0  ;;  %v4457_v53 = vpop.f32.mrb[38].mxu1 }
 0x1eb   :  { %v4349_v57 = vpop.f32.mrb[134].mxu0  ;;  %v2518_v5 = vmax.f32 %v1891_v2, 0.0  ;;  %v2629_v58 = vmax.f32 %v4457_v53, 0.0 }
 0x1ec   :  { %v2521_v62 = vmax.f32 %v4349_v57, 0.0  ;;  %v1894_v63 = vpop.f32.mrb[135].mxu0 }
 0x1ed   :  { %v2519_v7 = vmax.f32 %v1894_v63, 0.0 }
 0x1ee   :  { %v5502_v9 = vpack.c.bf16 %v2521_v62, %v2520_v61  ;;  %v2326_v61 = vpop.f32.mrb[39].mxu1 }
 0x1ef   :  { %v5504_v12 = vpack.c.bf16 %v2519_v7, %v2518_v5  ;;  %v2627_v54 = vmax.f32 %v2326_v61, 0.0  ;;  %v5520_v5 = vpack.c.bf16 %v2629_v58, %v2628_v47  ;;  %v4460_v0 = vpop.f32.mrb[40].mxu1 }
 0x1f1   :  { %v4352_v15 = vpop.f32.mrb[136].mxu0  ;;  %v5524_v8 = vpack.c.bf16 %v2627_v54, %v2626_v44 }
 0x1f2   :  { %v1907_v17 = vpop.f32.mrb[137].mxu0  ;;  %v2524_v22 = vmax.f32 %v4352_v15, 0.0  ;;  %v2632_v15 = vmax.f32 %v4460_v0, 0.0 }
 0x1f3   :  { %v4353_v19 = vpop.f32.mrb[138].mxu0  ;;  %v2522_v29 = vmax.f32 %v1907_v17, 0.0  ;;  %v2339_v17 = vpop.f32.mrb[41].mxu1 }
 0x1f4   :  { %v2525_v23 = vmax.f32 %v4353_v19, 0.0  ;;  %v1910_v24 = vpop.f32.mrb[139].mxu0  ;;  %v2630_v19 = vmax.f32 %v2339_v17, 0.0  ;;  %v4461_v16 = vpop.f32.mrb[42].mxu1 }
 0x1f5   :  { %v2523_v31 = vmax.f32 %v1910_v24, 0.0  ;;  %v2633_v25 = vmax.f32 %v4461_v16, 0.0  ;;  %v2342_v27 = vpop.f32.mrb[43].mxu1 }
 0x1f6   :  { %v5510_v33 = vpack.c.bf16 %v2525_v23, %v2524_v22  ;;  %v2631_v35 = vmax.f32 %v2342_v27, 0.0 }
 0x1f7   :  { %v5512_v32 = vpack.c.bf16 %v2523_v31, %v2522_v29  ;;  %v5526_v36 = vpack.c.bf16 %v2633_v25, %v2632_v15 }
 0x1f8   :  { %v5528_v43 = vpack.c.bf16 %v2631_v35, %v2630_v19 }
 0x1f9   :  { %v4356_v39 = vpop.f32.mrb[140].mxu0 }
 0x1fa   :  { %v1923_v59 = vpop.f32.mrb[141].mxu0  ;;  %v2528_v2 = vmax.f32 %v4356_v39, 0.0 }
 0x1fb   :  { %v4357_v49 = vpop.f32.mrb[142].mxu0  ;;  %v2526_v62 = vmax.f32 %v1923_v59, 0.0  ;;  %v4464_v59 = vpop.f32.mrb[44].mxu1 }
 0x1fc   :  { %v2529_v55 = vmax.f32 %v4357_v49, 0.0  ;;  %v1926_v57 = vpop.f32.mrb[143].mxu0  ;;  %v2636_v48 = vmax.f32 %v4464_v59, 0.0  ;;  %v2355_v49 = vpop.f32.mrb[45].mxu1 }
 0x1fd   :  { %v2527_v63 = vmax.f32 %v1926_v57, 0.0  ;;  %v2634_v53 = vmax.f32 %v2355_v49, 0.0 }
 0x1fe   :  { %v5518_v1 = vpack.c.bf16 %v2529_v55, %v2528_v2  ;;  %v4465_v2 = vpop.f32.mrb[46].mxu1 }
 0x1ff   :  { %v5522_v7 = vpack.c.bf16 %v2527_v63, %v2526_v62  ;;  %v2637_v61 = vmax.f32 %v4465_v2, 0.0  ;;  %v2358_v62 = vpop.f32.mrb[47].mxu1 }
 0x200   :  { %v2635_v0 = vmax.f32 %v2358_v62, 0.0  ;;  %v4468_v17 = vpop.f32.mrb[48].mxu1 }
 0x201   :  { %v4360_v3 = vpop.f32.mrb[144].mxu0  ;;  %v2640_v16 = vmax.f32 %v4468_v17, 0.0 }
 0x202   :  { %v1939_v4 = vpop.f32.mrb[145].mxu0  ;;  %v2532_v22 = vmax.f32 %v4360_v3, 0.0  ;;  %v5534_v15 = vpack.c.bf16 %v2635_v0, %v2634_v53 }
 0x203   :  { %v4361_v18 = vpop.f32.mrb[146].mxu0  ;;  %v2530_v29 = vmax.f32 %v1939_v4, 0.0  ;;  %v5532_v4 = vpack.c.bf16 %v2637_v61, %v2636_v48 }
 0x204   :  { %v2533_v23 = vmax.f32 %v4361_v18, 0.0  ;;  %v1942_v24 = vpop.f32.mrb[147].mxu0 }
 0x205   :  { %v2531_v31 = vmax.f32 %v1942_v24, 0.0 }
 0x206   :  { %v2723_v34 = vpack.c.bf16 %v2533_v23, %v2532_v22  ;;  %v2371_v22 = vpop.f32.mrb[49].mxu1 }
 0x207   :  { %v2722_v37 = vpack.c.bf16 %v2531_v31, %v2530_v29  ;;  %v2638_v24 = vmax.f32 %v2371_v22, 0.0  ;;  %v4469_v25 = vpop.f32.mrb[50].mxu1 }
 0x208   :  { %v2641_v31 = vmax.f32 %v4469_v25, 0.0  ;;  %v2374_v35 = vpop.f32.mrb[51].mxu1 }
 0x209   :  { %v4364_v39 = vpop.f32.mrb[148].mxu0  ;;  %4084 = vmatprep.subr.bf16.mxu1 %v2722_v37  ;;  %v4012_v59 = vpop.f32.mrb[52].mxu1 }
 0x20a   :  { %v1955_v47 = vpop.f32.mrb[149].mxu0  ;;  %4085 = vmatpush3.bf16.msra.mxu1 %v5496_v50  ;;  %v2536_v55 = vmax.f32 %v4364_v39, 0.0  ;;  %v2639_v39 = vmax.f32 %v2374_v35, 0.0  ;;  %v5538_v48 = vpack.c.bf16 %v2641_v31, %v2640_v16 }
 0x20b   :  { %v4365_v44 = vpop.f32.mrb[150].mxu0  ;;  %4086 = vmatprep.subr.bf16.mxu1 %v2723_v34  ;;  %v2534_v63 = vmax.f32 %v1955_v47, 0.0 }
 0x20c   :  { %v2537_v57 = vmax.f32 %v4365_v44, 0.0  ;;  %v1958_v58 = vpop.f32.mrb[151].mxu0  ;;  %v5540_v44 = vpack.c.bf16 %v2639_v39, %v2638_v24 }
 0x20d   :  { %v2535_v54 = vmax.f32 %v1958_v58, 0.0 }
 0x20e   :  { %v2725_v3 = vpack.c.bf16 %v2537_v57, %v2536_v55  ;;  %4087 = vmatpush3.bf16.msra.mxu1 %v5493_v40 }
 0x20f   :  { %v2724_v50 = vpack.c.bf16 %v2535_v54, %v2534_v63 }
 0x211   :  { %v4368_v18 = vpop.f32.mrb[152].mxu0  ;;  %4088 = vmatprep.subr.bf16.mxu1 %v2724_v50 }
 0x212   :  { %v1971_v19 = vpop.f32.mrb[153].mxu0  ;;  %4089 = vmatpush3.bf16.msra.mxu1 %v5504_v12  ;;  %v2540_v27 = vmax.f32 %v4368_v18, 0.0  ;;  %v4013_v12 = vpop.f32.mrb[53].mxu1 }
 0x213   :  { %v4369_v23 = vpop.f32.mrb[154].mxu0  ;;  %4090 = vmatprep.subr.bf16.mxu1 %v2725_v3  ;;  %v2538_v34 = vmax.f32 %v1971_v19, 0.0  ;;  %v5542_v53 = vadd.f32 %v4013_v12, %v4012_v59  ;;  %v4015_v2 = vpop.f32.mrb[54].mxu1 }
 0x214   :  { %v2541_v29 = vmax.f32 %v4369_v23, 0.0  ;;  %v1974_v40 = vpop.f32.mrb[155].mxu0  ;;  %v4016_v55 = vpop.f32.mrb[55].mxu1 }
 0x215   :  { %v2539_v37 = vmax.f32 %v1974_v40, 0.0 }
 0x216   :  { %v2727_v47 = vpack.c.bf16 %v2541_v29, %v2540_v27  ;;  %4091 = vmatpush3.bf16.msra.mxu1 %v5502_v9 }
 0x217   :  { %v2726_v49 = vpack.c.bf16 %v2539_v37, %v2538_v34 }
 0x219   :  { %v4372_v57 = vpop.f32.mrb[156].mxu0  ;;  %4092 = vmatprep.subr.bf16.mxu1 %v2726_v49 }
 0x21a   :  { %v1987_v58 = vpop.f32.mrb[157].mxu0  ;;  %4093 = vmatpush3.bf16.msra.mxu1 %v5512_v32  ;;  %v2544_v62 = vmax.f32 %v4372_v57, 0.0  ;;  %v5550_v32 = vld [vmem:[%s5752_s2 + $0x28] sm:$0xff] }
 0x21b   :  { %v4373_v61 = vpop.f32.mrb[158].mxu0  ;;  %4094 = vmatprep.subr.bf16.mxu1 %v2727_v47  ;;  %v2542_v54 = vmax.f32 %v1987_v58, 0.0 }
 0x21c   :  { %v2545_v63 = vmax.f32 %v4373_v61, 0.0  ;;  %v1990_v9 = vpop.f32.mrb[159].mxu0 }
 0x21d   :  { %v2543_v0 = vmax.f32 %v1990_v9, 0.0 }
 0x21e   :  { %v2729_v3 = vpack.c.bf16 %v2545_v63, %v2544_v62  ;;  %4095 = vmatpush3.bf16.msra.mxu1 %v5510_v33  ;;  %v3857_v33 = vcombine.low %v5487_v30, %v5487_v30 }
 0x21f   :  { %v2728_v50 = vpack.c.bf16 %v2543_v0, %v2542_v54 }
 0x221   :  { %v4376_v17 = vpop.f32.mrb[160].mxu0  ;;  %4096 = vmatprep.subr.bf16.mxu1 %v2728_v50 }
 0x222   :  { %v2003_v18 = vpop.f32.mrb[161].mxu0  ;;  %4097 = vmatpush3.bf16.msra.mxu1 %v5522_v7  ;;  %v2548_v16 = vmax.f32 %v4376_v17, 0.0  ;;  %v3860_v7 = vcombine.high %v5550_v32, %v5550_v32 }
 0x223   :  { %v4377_v19 = vpop.f32.mrb[162].mxu0  ;;  %4098 = vmatprep.subr.bf16.mxu1 %v2729_v3  ;;  %v2546_v24 = vmax.f32 %v2003_v18, 0.0 }
 0x224   :  { %v2549_v22 = vmax.f32 %v4377_v19, 0.0  ;;  %v2006_v23 = vpop.f32.mrb[163].mxu0 }
 0x225   :  { %v2547_v25 = vmax.f32 %v2006_v23, 0.0 }
 0x226   :  { %v5554_v27 = vpack.c.bf16 %v2549_v22, %v2548_v16  ;;  %4099 = vmatpush3.bf16.msra.mxu1 %v5518_v1 }
 0x227   :  { %v2730_v29 = vpack.c.bf16 %v2547_v25, %v2546_v24 }
 0x229   :  { %v4380_v40 = vpop.f32.mrb[164].mxu0  ;;  %3027 = vmatmul.mubr.bf16.vlgmr.msra.gmra.mrb[68].mxu1 %v3857_v33 }
 0x22a   :  { %v2019_v31 = vpop.f32.mrb[165].mxu0  ;;  %3066 = vmatprep.mubr.bf16.mxu1 %v3860_v7  ;;  %v2552_v34 = vmax.f32 %v4380_v40, 0.0 }
 0x22b   :  { %v4381_v35 = vpop.f32.mrb[166].mxu0  ;;  %v2550_v59 = vmax.f32 %v2019_v31, 0.0 }
 0x22c   :  { %v2553_v37 = vmax.f32 %v4381_v35, 0.0  ;;  %v2022_v39 = vpop.f32.mrb[167].mxu0 }
 0x22d   :  { %v2551_v47 = vmax.f32 %v2022_v39, 0.0 }
 0x22e   :  { %v5559_v12 = vpack.c.bf16 %v2553_v37, %v2552_v34 }
 0x22f   :  { %v2732_v30 = vpack.c.bf16 %v2551_v47, %v2550_v59 }
 0x231   :  { %v4384_v49 = vpop.f32.mrb[168].mxu0 }
 0x232   :  { %v2035_v2 = vpop.f32.mrb[169].mxu0  ;;  %v2556_v55 = vmax.f32 %v4384_v49, 0.0 }
 0x233   :  { %v4385_v1 = vpop.f32.mrb[170].mxu0  ;;  %v2554_v61 = vmax.f32 %v2035_v2, 0.0 }
 0x234   :  { %v2557_v57 = vmax.f32 %v4385_v1, 0.0  ;;  %v2038_v58 = vpop.f32.mrb[171].mxu0 }
 0x235   :  { %v2555_v62 = vmax.f32 %v2038_v58, 0.0 }
 0x236   :  { %v5561_v63 = vpack.c.bf16 %v2557_v57, %v2556_v55 }
 0x237   :  { %v2734_v9 = vpack.c.bf16 %v2555_v62, %v2554_v61 }
 0x239   :  { %v4388_v54 = vpop.f32.mrb[172].mxu0 }
 0x23a   :  { %v2051_v0 = vpop.f32.mrb[173].mxu0  ;;  %v2560_v50 = vmax.f32 %v4388_v54, 0.0 }
 0x23b   :  { %v4389_v3 = vpop.f32.mrb[174].mxu0  ;;  %v2558_v16 = vmax.f32 %v2051_v0, 0.0 }
 0x23c   :  { %v2561_v17 = vmax.f32 %v4389_v3, 0.0  ;;  %v2054_v18 = vpop.f32.mrb[175].mxu0  ;;  %v4034_v19 = vpop.f32.mrb[56].mxu1 }
 0x23d   :  { %v2559_v22 = vmax.f32 %v2054_v18, 0.0  ;;  %v4035_v23 = vpop.f32.mrb[57].mxu1 }
 0x23e   :  { %v5563_v24 = vpack.c.bf16 %v2561_v17, %v2560_v50  ;;  %v4036_v25 = vadd.f32 %v4035_v23, %v4034_v19  ;;  %v4037_v33 = vpop.f32.mrb[58].mxu1 }
 0x23f   :  { %v2736_v7 = vpack.c.bf16 %v2559_v22, %v2558_v16  ;;  %v4038_v40 = vpop.f32.mrb[59].mxu1 }
 0x240   :  { %v5566_v31 = vadd.f32 %v4036_v25, %v5542_v53 }
 0x241   :  { %v4392_v35 = vpop.f32.mrb[176].mxu0 }
 0x242   :  { %v2067_v34 = vpop.f32.mrb[177].mxu0  ;;  %v2564_v39 = vmax.f32 %v4392_v35, 0.0 }
 0x243   :  { %v4393_v37 = vpop.f32.mrb[178].mxu0  ;;  %v2562_v49 = vmax.f32 %v2067_v34, 0.0 }
 0x244   :  { %v2565_v59 = vmax.f32 %v4393_v37, 0.0  ;;  %v2070_v47 = vpop.f32.mrb[179].mxu0 }
 0x245   :  { %v2563_v2 = vmax.f32 %v2070_v47, 0.0 }
 0x246   :  { %v2739_v1 = vpack.c.bf16 %v2565_v59, %v2564_v39 }
 0x247   :  { %v2738_v55 = vpack.c.bf16 %v2563_v2, %v2562_v49 }
 0x249   :  { %v4396_v57 = vpop.f32.mrb[180].mxu0  ;;  %4106 = vmatprep.subr.bf16.mxu1 %v2738_v55 }
 0x24a   :  { %v2083_v58 = vpop.f32.mrb[181].mxu0  ;;  %4107 = vmatpush3.bf16.msra.mxu1 %v2730_v29  ;;  %v2568_v62 = vmax.f32 %v4396_v57, 0.0 }
 0x24b   :  { %v4397_v61 = vpop.f32.mrb[182].mxu0  ;;  %4108 = vmatprep.subr.bf16.mxu1 %v2739_v1  ;;  %v2566_v0 = vmax.f32 %v2083_v58, 0.0 }
 0x24c   :  { %v2569_v54 = vmax.f32 %v4397_v61, 0.0  ;;  %v2086_v53 = vpop.f32.mrb[183].mxu0 }
 0x24d   :  { %v2567_v3 = vmax.f32 %v2086_v53, 0.0 }
 0x24e   :  { %v2741_v50 = vpack.c.bf16 %v2569_v54, %v2568_v62  ;;  %4109 = vmatpush3.bf16.msra.mxu1 %v5554_v27 }
 0x24f   :  { %v2740_v17 = vpack.c.bf16 %v2567_v3, %v2566_v0  ;;  %v3859_v0 = vcombine.low %v5550_v32, %v5550_v32 }
 0x251   :  { %v4400_v18 = vpop.f32.mrb[184].mxu0  ;;  %4110 = vmatprep.subr.bf16.mxu1 %v2740_v17 }
 0x252   :  { %v2099_v19 = vpop.f32.mrb[185].mxu0  ;;  %4111 = vmatpush3.bf16.msra.mxu1 %v2732_v30  ;;  %v2572_v22 = vmax.f32 %v4400_v18, 0.0 }
 0x253   :  { %v4401_v16 = vpop.f32.mrb[186].mxu0  ;;  %4112 = vmatprep.subr.bf16.mxu1 %v2741_v50  ;;  %v2570_v25 = vmax.f32 %v2099_v19, 0.0 }
 0x254   :  { %v2573_v23 = vmax.f32 %v4401_v16, 0.0  ;;  %v2102_v29 = vpop.f32.mrb[187].mxu0 }
 0x255   :  { %v2571_v33 = vmax.f32 %v2102_v29, 0.0 }
 0x256   :  { %v2743_v40 = vpack.c.bf16 %v2573_v23, %v2572_v22  ;;  %4113 = vmatpush3.bf16.msra.mxu1 %v5559_v12 }
 0x257   :  { %v2742_v35 = vpack.c.bf16 %v2571_v33, %v2570_v25 }
 0x259   :  { %v4404_v34 = vpop.f32.mrb[188].mxu0  ;;  %4114 = vmatprep.subr.bf16.mxu1 %v2742_v35 }
 0x25a   :  { %v2115_v37 = vpop.f32.mrb[189].mxu0  ;;  %4115 = vmatpush3.bf16.msra.mxu1 %v2734_v9  ;;  %v2576_v39 = vmax.f32 %v4404_v34, 0.0  ;;  %v2648_v9 = vld [vmem:[%s5752_s2 + $0x30] sm:$0xff] }
 0x25b   :  { %v4405_v27 = vpop.f32.mrb[190].mxu0  ;;  %4116 = vmatprep.subr.bf16.mxu1 %v2743_v40  ;;  %v2574_v47 = vmax.f32 %v2115_v37, 0.0  ;;  %v3862_v3 = vcombine.high %v2648_v9, %v2648_v9 }
 0x25c   :  { %v2577_v59 = vmax.f32 %v4405_v27, 0.0  ;;  %v2118_v30 = vpop.f32.mrb[191].mxu0 }
 0x25d   :  { %v2575_v49 = vmax.f32 %v2118_v30, 0.0 }
 0x25e   :  { %v2745_v2 = vpack.c.bf16 %v2577_v59, %v2576_v39  ;;  %4117 = vmatpush3.bf16.msra.mxu1 %v5561_v63 }
 0x25f   :  { %v2744_v1 = vpack.c.bf16 %v2575_v49, %v2574_v47 }
 0x261   :  { %v4408_v55 = vpop.f32.mrb[192].mxu0  ;;  %4118 = vmatprep.subr.bf16.mxu1 %v2744_v1  ;;  %v3164_v1 = vld [vmem:[%s5753_s3 + $0x48] sm:$0xff] }
 0x262   :  { %v2580_v57 = vmax.f32 %v4408_v55, 0.0  ;;  %v2131_v12 = vpop.f32.mrb[193].mxu0  ;;  %4119 = vmatpush3.bf16.msra.mxu1 %v2736_v7 }
 0x263   :  { %v4409_v58 = vpop.f32.mrb[194].mxu0  ;;  %4120 = vmatprep.subr.bf16.mxu1 %v2745_v2  ;;  %v2578_v54 = vmax.f32 %v2131_v12, 0.0  ;;  %v3861_v2 = vcombine.low %v2648_v9, %v2648_v9  ;;  %v3166_v12 = vld [vmem:[%s5753_s3 + $0x58] sm:$0xff]  ;;  %v3167_v9 = vld [vmem:[%s5753_s3 + $0x60] sm:$0xff] }
 0x264   :  { %v2581_v61 = vmax.f32 %v4409_v58, 0.0  ;;  %v2134_v62 = vpop.f32.mrb[195].mxu0 }
 0x265   :  { %v2579_v53 = vmax.f32 %v2134_v62, 0.0 }
 0x266   :  { %v2747_v63 = vpack.c.bf16 %v2581_v61, %v2580_v57  ;;  %4121 = vmatpush3.bf16.msra.mxu1 %v5563_v24  ;;  %v3165_v57 = vld [vmem:[%s5753_s3 + $0x50] sm:$0xff]  ;;  %v3168_v61 = vld [vmem:[%s5753_s3 + $0x68] sm:$0xff] }
 0x267   :  { %v2746_v50 = vpack.c.bf16 %v2579_v53, %v2578_v54  ;;  %4128 = vmatprep.subr.bf16.mxu1 %v5459_v51  ;;  %v4561_v58 = vpack.c.bf16 %v3166_v12, %v3165_v57  ;;  %v4564_v62 = vpack.c.bf16 %v3168_v61, %v3167_v9  ;;  %v3169_v53 = vld [vmem:[%s5753_s3 + $0x70] sm:$0xff] }
 0x269   :  { %v4412_v7 = vpop.f32.mrb[196].mxu0  ;;  %3067 = vmatmul.mubr.bf16.vlgmr.msra.gmra.mrb[72].mxu1 %v3859_v0  ;;  %v3170_v0 = vld [vmem:[%s5753_s3 + $0x78] sm:$0xff] }
 0x26a   :  { %v2584_v17 = vmax.f32 %v4412_v7, 0.0  ;;  %v2147_v18 = vpop.f32.mrb[197].mxu0  ;;  %4129 = vmatpush3.bf16.msra.mxu1 %v2746_v50  ;;  %3106 = vmatprep.mubr.bf16.mxu1 %v3862_v3  ;;  %v4567_v3 = vpack.c.bf16 %v3170_v0, %v3169_v53 }
 0x26b   :  { %v4413_v19 = vpop.f32.mrb[198].mxu0  ;;  %4130 = vmatprep.subr.bf16.mxu1 %v5457_v60  ;;  %v2582_v23 = vmax.f32 %v2147_v18, 0.0 }
 0x26c   :  { %v2585_v16 = vmax.f32 %v4413_v19, 0.0  ;;  %v2150_v22 = vpop.f32.mrb[199].mxu0  ;;  %v4781_v19 = vmov 0.0  }
 0x26d   :  { %v2583_v32 = vmax.f32 %v2150_v22, 0.0 }
 0x26e   :  { %v2749_v29 = vpack.c.bf16 %v2585_v16, %v2584_v17  ;;  %4131 = vmatpush3.bf16.msra.mxu1 %v2747_v63 }
 0x26f   :  { %v2748_v24 = vpack.c.bf16 %v2583_v32, %v2582_v23  ;;  %4132 = vmatprep.subr.bf16.mxu1 %v5463_v11 }
 0x271   :  { %v4416_v25 = vpop.f32.mrb[200].mxu0 }
 0x272   :  { %v2588_v51 = vmax.f32 %v4416_v25, 0.0  ;;  %v2163_v33 = vpop.f32.mrb[201].mxu0  ;;  %4133 = vmatpush3.bf16.msra.mxu1 %v2748_v24 }
 0x273   :  { %v4417_v40 = vpop.f32.mrb[202].mxu0  ;;  %4134 = vmatprep.subr.bf16.mxu1 %v5461_v20  ;;  %v2586_v37 = vmax.f32 %v2163_v33, 0.0 }
 0x274   :  { %v2589_v35 = vmax.f32 %v4417_v40, 0.0  ;;  %v2166_v34 = vpop.f32.mrb[203].mxu0 }
 0x275   :  { %v2587_v60 = vmax.f32 %v2166_v34, 0.0 }
 0x276   :  { %v2751_v27 = vpack.c.bf16 %v2589_v35, %v2588_v51  ;;  %4135 = vmatpush3.bf16.msra.mxu1 %v2749_v29 }
 0x277   :  { %v2750_v39 = vpack.c.bf16 %v2587_v60, %v2586_v37  ;;  %4136 = vmatprep.subr.bf16.mxu1 %v5469_v56  ;;  %v2649_v56 = vld [vmem:[%s5752_s2 + $0x38] sm:$0xff]  ;;  %v3246_v60 = vld [vmem:[%s5754_s4] sm:$0xff] }
 0x27a   :  { %4137 = vmatpush3.bf16.msra.mxu1 %v2750_v39 }
 0x27b   :  { %4138 = vmatprep.subr.bf16.mxu1 %v5467_v10  ;;  %v3864_v10 = vcombine.high %v2649_v56, %v2649_v56 }
 0x27c   :  { %v4056_v11 = vpop.f32.mrb[60].mxu1 }
 0x27d   :  { %v4057_v59 = vpop.f32.mrb[61].mxu1 }
 0x27e   :  { %4139 = vmatpush3.bf16.msra.mxu1 %v2751_v27  ;;  %v4058_v30 = vadd.f32 %v4057_v59, %v4056_v11  ;;  %v4059_v47 = vpop.f32.mrb[62].mxu1  ;;  %v3247_v27 = vld [vmem:[%s5754_s4 + $0x8] sm:$0xff] }
 0x27f   :  { %4140 = vmatprep.subr.bf16.mxu1 %v5475_v6  ;;  %v4060_v20 = vpop.f32.mrb[63].mxu1  ;;  %v4570_v47 = vpack.c.bf16 %v3247_v27, %v3246_v60 }
 0x280   :  { %v2949_v49 = vadd.f32 %v4058_v30, %v5566_v31  ;;  %v3163_v31 = vld [vmem:[%s5753_s3 + $0x40] sm:$0xff] }
 0x281   :  { %v4558_v55 = vpack.c.bf16 %v3164_v1, %v3163_v31  ;;  %v3154_v1 = vld [vmem:[%s5755_s5] sm:$0xff] }
 0x282   :  { %4141 = vmatpush3.bf16.msra.mxu1 %v5451_v42 }
 0x283   :  { %4142 = vmatprep.subr.bf16.mxu1 %v5473_v21 }
 0x286   :  { %4143 = vmatpush3.bf16.msra.mxu1 %v5449_v41  ;;  %v3863_v41 = vcombine.low %v2649_v56, %v2649_v56  ;;  %v3249_v56 = vld [vmem:[%s5754_s4 + $0x18] sm:$0xff] }
 0x287   :  { %4150 = vmatprep.subr.bf16.mxu1 %v5524_v8 }
 0x289   :  { %3107 = vmatmul.mubr.bf16.vlgmr.msra.gmra.mrb[76].mxu1 %v3861_v2 }
 0x28a   :  { %4151 = vmatpush3.bf16.msra.mxu1 %v5481_v26  ;;  %3146 = vmatprep.mubr.bf16.mxu1 %v3864_v10  ;;  %v3250_v10 = vld [vmem:[%s5754_s4 + $0x20] sm:$0xff] }
 0x28b   :  { %4152 = vmatprep.subr.bf16.mxu1 %v5520_v5  ;;  %v3158_v5 = vld [vmem:[%s5753_s3 + $0x18] sm:$0xff] }
 0x28e   :  { %4153 = vmatpush3.bf16.msra.mxu1 %v5479_v38 }
 0x28f   :  { %4154 = vmatprep.subr.bf16.mxu1 %v5528_v43  ;;  %v3160_v43 = vld [vmem:[%s5753_s3 + $0x28] sm:$0xff] }
 0x292   :  { %4155 = vmatpush3.bf16.msra.mxu1 %v5500_v52  ;;  %v3155_v52 = vld [vmem:[%s5753_s3] sm:$0xff] }
 0x293   :  { %4156 = vmatprep.subr.bf16.mxu1 %v5526_v36  ;;  %v3159_v36 = vld [vmem:[%s5753_s3 + $0x20] sm:$0xff] }
 0x296   :  { %4157 = vmatpush3.bf16.msra.mxu1 %v5498_v14 }
 0x297   :  { %4158 = vmatprep.subr.bf16.mxu1 %v5534_v15  ;;  %v3161_v15 = vld [vmem:[%s5753_s3 + $0x30] sm:$0xff] }
 0x29a   :  { %4159 = vmatpush3.bf16.msra.mxu1 %v5508_v13  ;;  %v3157_v13 = vld [vmem:[%s5753_s3 + $0x10] sm:$0xff] }
 0x29b   :  { %4160 = vmatprep.subr.bf16.mxu1 %v5532_v4  ;;  %v4549_v8 = vpack.c.bf16 %v3158_v5, %v3157_v13  ;;  %v4552_v4 = vpack.c.bf16 %v3160_v43, %v3159_v36  ;;  %v3257_v13 = vld [vmem:[%s5754_s4 + $0x58] sm:$0xff]  ;;  %v3258_v5 = vld [vmem:[%s5754_s4 + $0x60] sm:$0xff]  ;;  %v3260_v43 = vld [vmem:[%s5754_s4 + $0x70] sm:$0xff] }
 0x29e   :  { %4161 = vmatpush3.bf16.msra.mxu1 %v5506_v28  ;;  %v3156_v28 = vld [vmem:[%s5753_s3 + $0x8] sm:$0xff] }
 0x29f   :  { %4162 = vmatprep.subr.bf16.mxu1 %v5540_v44 }
 0x2a2   :  { %4163 = vmatpush3.bf16.msra.mxu1 %v5516_v46  ;;  %v4546_v46 = vpack.c.bf16 %v3156_v28, %v3155_v52  ;;  %v3256_v28 = vld [vmem:[%s5754_s4 + $0x50] sm:$0xff] }
 0x2a3   :  { %4164 = vmatprep.subr.bf16.mxu1 %v5538_v48  ;;  %v3162_v48 = vld [vmem:[%s5753_s3 + $0x38] sm:$0xff] }
 0x2a4   :  { %v4555_v44 = vpack.c.bf16 %v3162_v48, %v3161_v15  ;;  %v3171_v48 = vlaneseq }
 0x2a6   :  { %4165 = vmatpush3.bf16.msra.mxu1 %v5514_v45  ;;  %v4779_v45 = vmov 0.0|0.0  }
 0x2a7   :  { %4545 = vmatprep.subr.bf16.mxu1 %v4779_v45 }
 0x2a9   :  { %3147 = vmatmul.mubr.bf16.vlgmr.msra.gmra.mrb[80].mxu1 %v3863_v41  ;;  %v3251_v41 = vld [vmem:[%s5754_s4 + $0x28] sm:$0xff] }
 0x2aa   :  { %4547 = vmatpush3.bf16.msra.mxu1 %v4546_v46  ;;  %4502 = vmatprep.mubr.msk.f32.mxu1 %vm4780_vm1, %v4781_v19  ;;  %v4585_v46 = vpack.c.bf16 %v3257_v13, %v3256_v28 }
 0x2ab   :  { %4548 = vmatprep.subr.bf16.mxu1 %v4779_v45 }
 0x2ae   :  { %4550 = vmatpush3.bf16.msra.mxu1 %v4549_v8  ;;  %v3259_v8 = vld [vmem:[%s5754_s4 + $0x68] sm:$0xff] }
 0x2af   :  { %4551 = vmatprep.subr.bf16.mxu1 %v4779_v45  ;;  %v4588_v36 = vpack.c.bf16 %v3259_v8, %v3258_v5 }
 0x2b2   :  { %4553 = vmatpush3.bf16.msra.mxu1 %v4552_v4  ;;  %v3261_v4 = vld [vmem:[%s5754_s4 + $0x78] sm:$0xff] }
 0x2b3   :  { %4554 = vmatprep.subr.bf16.mxu1 %v4779_v45  ;;  %v4591_v15 = vpack.c.bf16 %v3261_v4, %v3260_v43 }
 0x2b6   :  { %4556 = vmatpush3.bf16.msra.mxu1 %v4555_v44  ;;  %v3172_v44 = vshrl.u32 %v3171_v48, 7 }
 0x2b7   :  { %4557 = vmatprep.subr.bf16.mxu1 %v4779_v45 }
 0x2b8   :  { %v3173_v31 = vsub.s32 0, %v3172_v44 }
 0x2ba   :  { %4559 = vmatpush3.bf16.msra.mxu1 %v4558_v55  ;;  %v3174_v55 = vrot.slane %v3154_v1, %v3173_v31 }
 0x2bb   :  { %4560 = vmatprep.subr.bf16.mxu1 %v4779_v45 }
 0x2bc   :  { %v4078_v42 = vpop.f32.mrb[64].mxu1 }
 0x2bd   :  { %v4079_v21 = vpop.f32.mrb[65].mxu1 }
 0x2be   :  { %v4080_v6 = vadd.f32 %v4079_v21, %v4078_v42  ;;  %v4081_v38 = vpop.f32.mrb[66].mxu1  ;;  %4562 = vmatpush3.bf16.msra.mxu1 %v4561_v58  ;;  %v4576_v42 = vpack.c.bf16 %v3251_v41, %v3250_v10  ;;  %v3252_v21 = vld [vmem:[%s5754_s4 + $0x30] sm:$0xff] }
 0x2bf   :  { %v4082_v26 = vpop.f32.mrb[67].mxu1  ;;  %4563 = vmatprep.subr.bf16.mxu1 %v4779_v45 }
 0x2c0   :  { %v2989_v14 = vadd.f32 %v4080_v6, %v2949_v49  ;;  %v3248_v49 = vld [vmem:[%s5754_s4 + $0x10] sm:$0xff]  ;;  %v3253_v6 = vld [vmem:[%s5754_s4 + $0x38] sm:$0xff]  ;;  %v3254_v26 = vld [vmem:[%s5754_s4 + $0x40] sm:$0xff] }
 0x2c1   :  { %v4573_v2 = vpack.c.bf16 %v3249_v56, %v3248_v49  ;;  %v4579_v38 = vpack.c.bf16 %v3253_v6, %v3252_v21 }
 0x2c2   :  { %4565 = vmatpush3.bf16.msra.mxu1 %v4564_v62 }
 0x2c3   :  { %4566 = vmatprep.subr.bf16.mxu1 %v4779_v45 }
 0x2c6   :  { %4568 = vmatpush3.bf16.msra.mxu1 %v4567_v3 }
 0x2c7   :  { %4569 = vmatprep.subr.bf16.mxu1 %v4779_v45 }
 0x2fc   :  { %v4100_v54 = vpop.f32.mrb[68].mxu1 }
 0x2fd   :  { %v4101_v63 = vpop.f32.mrb[69].mxu1 }
 0x2fe   :  { %v4102_v50 = vadd.f32 %v4101_v63, %v4100_v54  ;;  %v4103_v7 = vpop.f32.mrb[70].mxu1 }
 0x2ff   :  { %v4104_v17 = vpop.f32.mrb[71].mxu1 }
 0x300   :  { %v3029_v18 = vadd.f32 %v4102_v50, %v2989_v14  ;;  %v3255_v14 = vld [vmem:[%s5754_s4 + $0x48] sm:$0xff] }
 0x301   :  { %v4582_v52 = vpack.c.bf16 %v3255_v14, %v3254_v26 }
 0x33c   :  { %v4122_v16 = vpop.f32.mrb[72].mxu1 }
 0x33d   :  { %v4123_v22 = vpop.f32.mrb[73].mxu1 }
 0x33e   :  { %v4124_v23 = vadd.f32 %v4123_v22, %v4122_v16  ;;  %v4125_v32 = vpop.f32.mrb[74].mxu1 }
 0x33f   :  { %v4126_v29 = vpop.f32.mrb[75].mxu1 }
 0x340   :  { %v3069_v24 = vadd.f32 %v4124_v23, %v3029_v18 }
 0x35c   :  { %v4144_v25 = vpop.f32.mrb[76].mxu1 }
 0x35d   :  { %v4145_v51 = vpop.f32.mrb[77].mxu1 }
 0x35e   :  { %v4146_v33 = vadd.f32 %v4145_v51, %v4144_v25  ;;  %v4147_v40 = vpop.f32.mrb[78].mxu1 }
 0x35f   :  { %v4148_v35 = vpop.f32.mrb[79].mxu1 }
 0x360   :  { %v3109_v34 = vadd.f32 %v4146_v33, %v3069_v24 }
 0x37c   :  { %v4166_v37 = vpop.f32.mrb[80].mxu1 }
 0x37d   :  { %v4167_v39 = vpop.f32.mrb[81].mxu1 }
 0x37e   :  { %v4168_v11 = vadd.f32 %v4167_v39, %v4166_v37  ;;  %v4169_v59 = vpop.f32.mrb[82].mxu1 }
 0x37f   :  { %v4170_v30 = vpop.f32.mrb[83].mxu1 }
 0x380   :  { %v5672_v20 = vadd.f32 %v4168_v11, %v3109_v34 }
 0x382   :  { %4503 = vmatmul.mubr.f32.vlgmr.msra.gmra.mrb[84].mxu1 %v5672_v20 }
 0x383   :  { %4571 = vmatpush3.bf16.msra.mxu1 %v4570_v47  ;;  %4537 = vmatprep.mubr.msk.f32.mxu1 %vm4780_vm1, %v4781_v19 }
 0x384   :  { %4572 = vmatprep.subr.bf16.mxu1 %v4779_v45 }
 0x387   :  { %4574 = vmatpush3.bf16.msra.mxu1 %v4573_v2 }
 0x388   :  { %4575 = vmatprep.subr.bf16.mxu1 %v4779_v45 }
 0x38b   :  { %4577 = vmatpush3.bf16.msra.mxu1 %v4576_v42 }
 0x38c   :  { %4578 = vmatprep.subr.bf16.mxu1 %v4779_v45 }
 0x38f   :  { %4580 = vmatpush3.bf16.msra.mxu1 %v4579_v38 }
 0x390   :  { %4581 = vmatprep.subr.bf16.mxu1 %v4779_v45 }
 0x393   :  { %4583 = vmatpush3.bf16.msra.mxu1 %v4582_v52 }
 0x394   :  { %4584 = vmatprep.subr.bf16.mxu1 %v4779_v45 }
 0x397   :  { %4586 = vmatpush3.bf16.msra.mxu1 %v4585_v46 }
 0x398   :  { %4587 = vmatprep.subr.bf16.mxu1 %v4779_v45 }
 0x39b   :  { %4589 = vmatpush3.bf16.msra.mxu1 %v4588_v36 }
 0x39c   :  { %4590 = vmatprep.subr.bf16.mxu1 %v4779_v45  ;;  %v3264_v45 = vsub.s32 1, %v3172_v44 }
 0x39e   :  { %v3265_v62 = vrot.slane %v3154_v1, %v3264_v45 }
 0x39f   :  { %4592 = vmatpush3.bf16.msra.mxu1 %v4591_v15 }
 0x3a0   :  { %4540 = vmatprep.subr.mxu1 %v4781_v19 }
 0x455   :  { %v3241_v57 = vpop.f32.mrb[84].mxu1 }
 0x456   :  { %v3242_v12 = vadd.f32 %v3241_v57, %v3174_v55  ;;  %v4504_v58 = vpop.f32.mrb[85].mxu1 }
 0x458   :  { %v3245_v9 = vmax.f32 %v3242_v12, 0.0 }
 0x45a   :  { %4538 = vmatmul.mubr.f32.vlgmr.msra.gmra.mrb[86].mxu1 %v3245_v9  ;;  %v3386_v61 = vmul.f32 %v3245_v9, %v3245_v9 }
 0x45b   :  { %4541 = vmatpush3.xpose.msra.mxu1 %v3245_v9  ;;  %4542 = vmatprep.mubr.msk.f32.mxu1 %vm4780_vm1, %v4781_v19 }
 0x45c   :  { %3387 = vadd.xlane.f32.xlu1 %v3386_v61 }
 0x45e   :  { %4543 = vmatmul.mubr.f32.vlgmr.msra.gmra.mrb[88].mxu1 %v3245_v9 }
 0x4e9   :  { %v3388_v22 = vpop.xlane.xlu1 %3387 }
 0x52d   :  { %v3332_v54 = vpop.f32.mrb[86].mxu1 }
 0x52e   :  { %v5733_v53 = vadd.f32 %v3332_v54, %v3265_v62  ;;  %v4539_v0 = vpop.f32.mrb[87].mxu1 }
 0x530   :  { %v3349_v63 = vsel %vm3348_vm2, %v5733_v53, -inf }
 0x531   :  { %3350 = vmax.xlane.f32.xlu0 %v3349_v63  ;;  %v3455_v3 = vpop.f32.mrb[88].mxu1 }
 0x532   :  { %v4544_v50 = vpop.f32.mrb[89].mxu1  ;;  %v3496_v60 = vmul.f32 2.0, %v3455_v3 }
 0x5be   :  { %v3351_v7 = vpop.xlane.xlu0 %3350 }
 0x5bf   :  { %v3352_v17 = vsub.f32 %v5733_v53, %v3351_v7 }
 0x5c1   :  { %v3353_v18 = vmul.f32 1.442695, %v3352_v17 }
 0x5c3   :  { %4759 = vpow2.f32 %v3353_v18 }
 0x5cd   :  { %v4760_v19 = vpop.eup %4759 }
 0x5ce   :  { %v3355_v16 = vsel %vm3348_vm2, %v4760_v19, 0.0 }
 0x5cf   :  { %3356 = vadd.xlane.f32.xlu0 %v3355_v16 }
 0x5fc   :  { %3459 = vxpose.xlu0.b32.start.end [1/1] (short) (narrow) %v3388_v22, 8 }
 0x65c   :  { %v3357_v23 = vpop.xlane.xlu0 %3356 }
 0x65d   :  { %4761 = vlog2.f32 %v3357_v23 }
 0x667   :  { %v4762_v32 = vpop.eup %4761 }
 0x668   :  { %v3359_v29 = vmul.f32 0.6931472, %v4762_v32 }
 0x66a   :  { %v3360_v24 = vadd.f32 %v3359_v29, %v3351_v7 }
 0x66c   :  { %v3361_v25 = vsub.f32 %v5733_v53, %v3360_v24 }
 0x66e   :  { %v3363_v51 = vrot.slane %v3361_v25, 6 }
 0x670   :  { %v3365_v33 = vmul.f32 %v3363_v51, %v3154_v1 }
 0x672   :  { %v3367_v40 = vsel %vm3366_vm3, %v3365_v33, 0.0 }
 0x673   :  { %3368 = vadd.xlane.f32.xlu1 %v3367_v40 }
 0x67c   :  { %v3475_v35 = vpop.trf.xlu0 }
 0x67d   :  { %v3494_v34 = vrot.slane %v3475_v35, %v3173_v31 }
 0x67f   :  { %v3495_v37 = vadd.f32 %v3494_v34, %v3388_v22  ;;  %v3337_v22 = vsel %vm3336_vm6, %v5733_v53, -inf }
 0x681   :  { %v3497_v39 = vsub.f32 %v3495_v37, %v3496_v60 }
 0x683   :  { %v3498_v30 = vmax.f32 %v3497_v39, 0.0 }
 0x685   :  { %v3500_v49 = vsel %vm3499_vm5, %v3498_v30, 0.0 }
 0x700   :  { %v3369_v27 = vpop.xlane.xlu1 %3368 }
 0x701   :  { %v3370_v11 = vsub.f32 0.0, %v3369_v27 }
 0x703   :  { %v3372_v59 = vrot.slane %v3370_v11, 2 }
 0x705   :  { %v3375_v47 = vsel %vm3374_vm4, %v3372_v59, 0.0 }
 0x706   :  { %3376 = vadd.xlane.f32.xlu1 %v3375_v47 }
 0x70a   :  { %3501 = vadd.xlane.f32.xlu1 %v3500_v49 }
 0x793   :  { %v3377_v56 = vpop.xlane.xlu1 %3376 }
 0x794   :  { %v3378_v2 = vrot.slane %v3377_v56, 4 }
 0x796   :  { %v3379_v10 = vadd.f32 %v3378_v2, %v3377_v56 }
 0x797   :  { %v3502_v41 = vpop.xlane.xlu1 %3501 }
 0x798   :  { %v3380_v42 = vrot.slane %v3379_v10, 2  ;;  %v3503_v21 = vrot.slane %v3502_v41, 4 }
 0x79a   :  { %v3504_v6 = vadd.f32 %v3503_v21, %v3502_v41  ;;  %v3381_v38 = vadd.f32 %v3380_v42, %v3379_v10  ;;  %v3581_v10 = vrot.slane %v5672_v20, 4 }
 0x79c   :  { %v3505_v26 = vrot.slane %v3504_v6, 2  ;;  %v3382_v14 = vrot.slane %v3381_v38, 1 }
 0x79e   :  { %v3383_v52 = vadd.f32 %v3382_v14, %v3381_v38  ;;  %v3506_v28 = vadd.f32 %v3505_v26, %v3504_v6 }
 0x7a0   :  { %4599 = vpush %v3383_v52  ;;  %v3507_v13 = vrot.slane %v3506_v28, 1 }
 0x7a2   :  { %v3508_v46 = vadd.f32 %v3507_v13, %v3506_v28 }
 0x7a4   :  { %4601 = vpush %v3508_v46 }
 0x7d1   :  { %s5738_s4 = spop %4599 }
 0x7d2   :  { %s3385_s19 = smul.f32 0.25, %s5738_s4 }
 0x7d5   :  { %s4602_s5 = spop %4601 }
 0x7d6   :  { %s3510_s8 = smul.f32 0.017857144, %s4602_s5 }
 0x7d8   :  { %s3511_s9 = smax.f32 %s4782_s1, %s3510_s8 }
 0x7d9   :  { %s3512_s10 = smul.f32 0.25, %s3511_s9 }
 0x7db   :  { %v3513_v5 = vstv %s3512_s10 }
 0x7dc   :  { %4763 = vrcp.f32 %v3513_v5 }
 0x7e6   :  { %v4764_v8 = vpop.eup %4763 }
 0x7e7   :  { %4603 = vpush %v4764_v8 }
 0x818   :  { %s4604_s11 = spop %4603 }
 0x819   :  { %s3516_s12 = smul.f32 -1.0, %s4604_s11 }
 0x81a   :  { %s3522_s13 = smul.f32 -0.5, %s4604_s11 }
 0x81b   :  { %v3517_v36 = vstv %s3516_s12  ;;  %s3528_s0 = smul.f32 -0.25, %s4604_s11 }
 0x81c   :  { %v3518_v43 = vmul.f32 %v3517_v36, %v3498_v30  ;;  %v3523_v4 = vstv %s3522_s13  ;;  %s3534_s14 = smul.f32 -0.125, %s4604_s11 }
 0x81d   :  { %v3524_v15 = vmul.f32 %v3523_v4, %v3498_v30  ;;  %v3529_v44 = vstv %s3528_s0  ;;  %s3540_s15 = smul.f32 -0.0625, %s4604_s11 }
 0x81e   :  { %v3519_v31 = vmul.f32 1.442695, %v3518_v43  ;;  %v3530_v1 = vmul.f32 %v3529_v44, %v3498_v30  ;;  %v3535_v55 = vstv %s3534_s14 }
 0x81f   :  { %v3525_v57 = vmul.f32 1.442695, %v3524_v15  ;;  %v3536_v12 = vmul.f32 %v3535_v55, %v3498_v30  ;;  %v3541_v58 = vstv %s3540_s15 }
 0x820   :  { %4765 = vpow2.f32 %v3519_v31  ;;  %v3531_v9 = vmul.f32 1.442695, %v3530_v1  ;;  %v3542_v61 = vmul.f32 %v3541_v58, %v3498_v30 }
 0x821   :  { %4767 = vpow2.f32 %v3525_v57  ;;  %v3537_v45 = vmul.f32 1.442695, %v3536_v12 }
 0x822   :  { %4769 = vpow2.f32 %v3531_v9  ;;  %v3543_v62 = vmul.f32 1.442695, %v3542_v61 }
 0x823   :  { %4771 = vpow2.f32 %v3537_v45 }
 0x824   :  { %4773 = vpow2.f32 %v3543_v62 }
 0x82a   :  { %v4766_v54 = vpop.eup %4765 }
 0x82b   :  { %v4768_v0 = vpop.eup %4767 }
 0x82c   :  { %v3527_v63 = vadd.f32 %v4768_v0, %v4766_v54  ;;  %v4770_v3 = vpop.eup %4769 }
 0x82d   :  { %v4772_v7 = vpop.eup %4771 }
 0x82e   :  { %v3533_v50 = vadd.f32 %v4770_v3, %v3527_v63  ;;  %v4774_v18 = vpop.eup %4773 }
 0x830   :  { %v3539_v17 = vadd.f32 %v4772_v7, %v3533_v50 }
 0x832   :  { %v3545_v19 = vadd.f32 %v4774_v18, %v3539_v17 }
 0x834   :  { %v3547_v16 = vrot.slane %v3545_v19, 4 }
 0x836   :  { %3548 = vrot.lane.b32.xlu1 %v3547_v16, %s4783_s16 }
 0x83a   :  { %3552 = vrot.lane.b32.xlu1 %v3545_v19, %s4783_s16 }
 0x85e   :  { %3338 = vmax.xlane.f32.xlu1 %v3337_v22 }
 0x8a8   :  { %v3549_v23 = vpop.permute.xlu1 %3548 }
 0x8a9   :  { %v3551_v32 = vadd.f32 %v3549_v23, %v3545_v19 }
 0x8ac   :  { %v3553_v29 = vpop.permute.xlu1 %3552 }
 0x8ad   :  { %v3555_v24 = vsub.f32 %v3551_v32, %v3553_v29 }
 0x8af   :  { %v3557_v25 = vsub.f32 %v3555_v24, %v3547_v16 }
 0x8b1   :  { %v3559_v51 = vsel %vm3558_vm7, %v3557_v25, 0.0 }
 0x8b2   :  { %3560 = vadd.xlane.f32.xlu0 %v3559_v51 }
 0x8eb   :  { %v3339_v33 = vpop.xlane.xlu1 %3338 }
 0x8ec   :  { %v3340_v40 = vsub.f32 %v5733_v53, %v3339_v33  ;;  %v3576_v53 = vand.u32 127, %v3171_v48 }
 0x8ee   :  { %v3341_v35 = vmul.f32 1.442695, %v3340_v40  ;;  %vm3577_vm9 = vcmp.eq.s32.totalorder %v3576_v53, 5 }
 0x8f0   :  { %4775 = vpow2.f32 %v3341_v35 }
 0x8fa   :  { %v4776_v34 = vpop.eup %4775 }
 0x8fb   :  { %v3343_v37 = vsel %vm3336_vm6, %v4776_v34, 0.0 }
 0x8fc   :  { %3344 = vadd.xlane.f32.xlu1 %v3343_v37 }
 0x93f   :  { %v3561_v60 = vpop.xlane.xlu0 %3560 }
 0x940   :  { %v3562_v27 = vrot.slane %v3561_v60, 4 }
 0x942   :  { %v3563_v39 = vadd.f32 %v3562_v27, %v3561_v60 }
 0x944   :  { %v3564_v11 = vrot.slane %v3563_v39, 2 }
 0x946   :  { %v3565_v59 = vadd.f32 %v3564_v11, %v3563_v39 }
 0x948   :  { %v3566_v30 = vrot.slane %v3565_v59, 1 }
 0x94a   :  { %v3567_v47 = vadd.f32 %v3566_v30, %v3565_v59 }
 0x94c   :  { %4605 = vpush %v3567_v47 }
 0x97d   :  { %s4606_s17 = spop %4605 }
 0x97e   :  { %s3571_s18 = smul.f32 0.0625, %s4606_s17 }
 0x980   :  { %s3572_s20 = sadd.f32 %s3571_s18, %s3385_s19 }
 0x982   :  { %v3578_v41 = vstv %s3572_s20 }
 0x989   :  { %v3345_v49 = vpop.xlane.xlu1 %3344 }
 0x98a   :  { %4777 = vrcp.f32 %v3345_v49 }
 0x994   :  { %v4778_v56 = vpop.eup %4777 }
 0x995   :  { %v3347_v2 = vmul.f32 %v4778_v56, %v4776_v34 }
 0x997   :  { %v3574_v42 = vsel %vm3573_vm8, %v3347_v2, 0.0 }
 0x998   :  { %v3579_v21 = vsel %vm3577_vm9, %v3578_v41, %v3574_v42 }
 0x999   :  { %v3584_v6 = vsel %vm3583_vm10, %v3581_v10, %v3579_v21 }
 0x99a   :  { %3585 = vst [vmem:[%s5756_s6] sm:$0xff] %v3584_v6 }

</bundles_post_ra>
